<compile_context>
chip_gen: v5e
topology: v5e:2x2
jax: 0.10.0
libtpu: 0.0.40
codegen_flags: <defaults>
</compile_context>

<pallas_src>
import jax
import jax.numpy as jnp
from jax.experimental import pallas as pl
from jax.experimental.pallas import tpu as pltpu

# ---- small hyper-parameters consistent with the module (L == P * S) ----------
PATCH_SIZE = 8                             # S
NUM_PATCHES = 4                            # P
HIDDEN_DIM = 32                            # H (patch_hidden_dim == time_hidden_dim)
THETAS_DIM = 8                             # T
BACKCAST_LEN = NUM_PATCHES * PATCH_SIZE    # L = 32
FORECAST_LEN = 8                           # F
BATCH = 8                                  # multiple of 8 -> full sublane groups
NUM_BLOCKS = 3                             # Model.num_blocks_per_stack

LN_EPS = 1e-5

HS = HIDDEN_DIM * PATCH_SIZE               # 256  patch-mix hidden, flattened
PH = NUM_PATCHES * HIDDEN_DIM              # 128  time-mix hidden, flattened
HEAD_W = BACKCAST_LEN + FORECAST_LEN       # 40   fused [backcast | forecast] head

# W_in slab column offsets (all 128-lane aligned)
WI_PM1, WI_TM1, WI_HEAD = 0, HS, HS + PH               # 0, 256, 384
WIN_WIDTH = HS + PH + HEAD_W                            # 424
# W_out slab row offsets (8-sublane aligned)
WO_PM2, WO_TM2 = 0, HS                                  # 0, 256
WOUT_ROWS = HS + PH                                     # 384
# bias slab column offsets (all 128-lane aligned)
B_PM1, B_TM1, B_PM2, B_TM2, B_HEAD = 0, 256, 384, 512, 640
BIAS_WIDTH = 768


def _gelu_exact(x):
    # Exact (erf-based) GELU, matching torch.nn.GELU() default.
    # erf via Abramowitz & Stegun 7.1.26 (|err| < 1.5e-7); exp goes to the EUP.
    z = x * 0.7071067811865476
    a = jnp.abs(z)
    t = 1.0 / (1.0 + 0.3275911 * a)
    poly = t * (0.254829592
                + t * (-0.284496736
                       + t * (1.421413741
                              + t * (-1.453152027 + t * 1.061405429))))
    erf_abs = 1.0 - poly * jnp.exp(-a * a)
    erf = jnp.where(z >= 0.0, erf_abs, -erf_abs)
    return 0.5 * x * (1.0 + erf)


def seasonality_stack_kernel(x_ref, mean_ref, w_in_ref, w_out_ref, bias_ref,
                             res_ref, fcast_ref):
    """Runs NUM_BLOCKS mixer blocks with residual stacking in one invocation.

    x_ref    : (B, L)                flattened (patch, time) layout, L = P*S
    mean_ref : (2, L, L)             [0]=patch-mean matrix, [1]=time-mean matrix
    w_in_ref : (NB, L, 424)          [W_pm1' | W_tm1' | W_head] per block
    w_out_ref: (NB, 384, L)          [W_pm2 ; W_tm2] per block
    bias_ref : (NB, 1, 768)          lane-aligned packed bias row per block
    res_ref  : (B, L)  output        input after subtracting all backcasts
    fcast_ref: (B, F)  output        accumulated seasonality forecast
    """
    f32 = jnp.float32
    B, L, F = BATCH, BACKCAST_LEN, FORECAST_LEN

    mean_p = mean_ref[0]                                  # (L, L)
    mean_s = mean_ref[1]                                  # (L, L)

    x = x_ref[...]                                        # (B, L) residual carrier
    fcast = jnp.zeros((B, F), f32)

    for blk in range(NUM_BLOCKS):      # unrolled; all slabs already in VMEM
        w_pm1 = w_in_ref[blk, :, WI_PM1:WI_PM1 + HS]           # (L, 256)
        w_tm1 = w_in_ref[blk, :, WI_TM1:WI_TM1 + PH]           # (L, 128)
        w_head = w_in_ref[blk, :, WI_HEAD:WI_HEAD + HEAD_W]    # (L, 40)
        w_pm2 = w_out_ref[blk, WO_PM2:WO_PM2 + HS, :]          # (256, L)
        w_tm2 = w_out_ref[blk, WO_TM2:WO_TM2 + PH, :]          # (128, L)
        b_pm1 = bias_ref[blk, :, B_PM1:B_PM1 + HS]             # (1, 256)
        b_tm1 = bias_ref[blk, :, B_TM1:B_TM1 + PH]             # (1, 128)
        b_pm2 = bias_ref[blk, :, B_PM2:B_PM2 + L]              # (1, L)
        b_tm2 = bias_ref[blk, :, B_TM2:B_TM2 + L]              # (1, L)
        b_head = bias_ref[blk, :, B_HEAD:B_HEAD + HEAD_W]      # (1, L+F)

        # ---- patch mix: mixes across patches P per time slot (batched) ----
        # One stacked matmul gives mean and E[x^2]; var = E[x^2] - mu^2.
        stat = jnp.dot(jnp.concatenate([x, x * x], axis=0), mean_p,
                       preferred_element_type=f32)             # (2B, L)
        mu, ex2 = stat[0:B], stat[B:2 * B]
        xs = (x - mu) * jax.lax.rsqrt(ex2 - mu * mu + LN_EPS)  # LN affine folded in w_pm1/b_pm1
        h = _gelu_exact(jnp.dot(xs, w_pm1, preferred_element_type=f32) + b_pm1)
        x1 = x + jnp.dot(h, w_pm2, preferred_element_type=f32) + b_pm2

        # ---- time mix: mixes across time S within each patch (batched) ----
        stat2 = jnp.dot(jnp.concatenate([x1, x1 * x1], axis=0), mean_s,
                        preferred_element_type=f32)            # (2B, L)
        mu2, ex22 = stat2[0:B], stat2[B:2 * B]
        xs2 = (x1 - mu2) * jax.lax.rsqrt(ex22 - mu2 * mu2 + LN_EPS)
        h2 = _gelu_exact(jnp.dot(xs2, w_tm1, preferred_element_type=f32) + b_tm1)
        x2 = x1 + jnp.dot(h2, w_tm2, preferred_element_type=f32) + b_tm2

        # ---- fused head: single matmul -> [backcast | forecast] ----
        head = jnp.dot(x2, w_head, preferred_element_type=f32) + b_head   # (B, L+F)
        x = x - head[:, 0:L]                    # residual stacking -> next block input
        fcast = fcast + head[:, L:L + F]        # forecast accumulation

    res_ref[...] = x
    fcast_ref[...] = fcast


# ---------------- one-time weight plumbing (cache per parameter set) ----------
def precompute_stack_inputs(params_list):
    """All kron/tile/repeat/fold/concat glue; run ONCE, outside the call path."""
    P, S, L, F = NUM_PATCHES, PATCH_SIZE, BACKCAST_LEN, FORECAST_LEN
    f32 = jnp.float32
    eye_s = jnp.eye(S, dtype=f32)
    eye_p = jnp.eye(P, dtype=f32)
    mean_p = jnp.kron(jnp.full((P, P), 1.0 / P, f32), eye_s)    # (L, L)
    mean_s = jnp.kron(eye_p, jnp.full((S, S), 1.0 / S, f32))    # (L, L)
    mean_slab = jnp.stack([mean_p, mean_s], axis=0)             # (2, L, L)

    w_in, w_out, biases = [], [], []
    for p in params_list:
        # patch-mix Linear(P->H) lifted to (L, H*S), LN1 gamma/beta folded in.
        wk1 = jnp.kron(p["pm1_w"].T, eye_s)                                   # (L, HS)
        w_pm1 = jnp.repeat(p["ln1_w"], S)[:, None] * wk1
        b_pm1 = (jnp.repeat(p["ln1_b"], S)[None, :] @ wk1
                 + jnp.repeat(p["pm1_b"], S)[None, :])                        # (1, HS)
        # patch-mix Linear(H->P) lifted to (H*S, L).
        w_pm2 = jnp.kron(p["pm3_w"].T, eye_s)                                 # (HS, L)
        b_pm2 = jnp.repeat(p["pm3_b"], S)[None, :]                            # (1, L)
        # time-mix Linear(S->H) lifted to (L, P*H), LN2 gamma/beta folded in.
        wk2 = jnp.kron(eye_p, p["tm1_w"].T)                                   # (L, PH)
        w_tm1 = jnp.tile(p["ln2_w"], P)[:, None] * wk2
        b_tm1 = (jnp.tile(p["ln2_b"], P)[None, :] @ wk2
                 + jnp.tile(p["tm1_b"], P)[None, :])                          # (1, PH)
        # time-mix Linear(H->S) lifted to (P*H, L).
        w_tm2 = jnp.kron(eye_p, p["tm3_w"].T)                                 # (PH, L)
        b_tm2 = jnp.tile(p["tm3_b"], P)[None, :]                              # (1, L)
        # fused theta_b->backcast / theta_f->forecast head.
        w_head = jnp.concatenate([p["theta_b_w"].T @ p["bc_w"].T,
                                  p["theta_f_w"].T @ p["fc_w"].T], axis=1)    # (L, L+F)
        b_head = jnp.concatenate([p["bc_b"], p["fc_b"]])[None, :]             # (1, L+F)

        w_in.append(jnp.concatenate([w_pm1, w_tm1, w_head], axis=1))          # (L, 424)
        w_out.append(jnp.concatenate([w_pm2, w_tm2], axis=0))                 # (384, L)
        brow = jnp.zeros((1, BIAS_WIDTH), f32)
        brow = brow.at[:, B_PM1:B_PM1 + HS].set(b_pm1)
        brow = brow.at[:, B_TM1:B_TM1 + PH].set(b_tm1)
        brow = brow.at[:, B_PM2:B_PM2 + L].set(b_pm2)
        brow = brow.at[:, B_TM2:B_TM2 + L].set(b_tm2)
        brow = brow.at[:, B_HEAD:B_HEAD + HEAD_W].set(b_head)
        biases.append(brow)

    return (mean_slab,
            jnp.stack(w_in, axis=0),       # (NB, L, 424)
            jnp.stack(w_out, axis=0),      # (NB, 384, L)
            jnp.stack(biases, axis=0))     # (NB, 1, 768)


def seasonality_stack_forward(x, slabs):
    """x: (B, L) -> (residual input after the stack (B, L), forecast (B, F))."""
    mean_slab, w_in, w_out, biases = slabs
    B, L = x.shape
    F = FORECAST_LEN
    kernel_inputs = (x, mean_slab, w_in, w_out, biases)

    def full_spec(a):
        return pl.BlockSpec(a.shape, lambda i, _n=a.ndim: (0,) * _n)

    in_specs = [full_spec(a) for a in kernel_inputs]
    out_shape = (jax.ShapeDtypeStruct((B, L), jnp.float32),
                 jax.ShapeDtypeStruct((B, F), jnp.float32))
    out_specs = (pl.BlockSpec((B, L), lambda i: (0, 0)),
                 pl.BlockSpec((B, F), lambda i: (0, 0)))

    # Advisory cost estimate (kernel is tiny / latency bound).
    flops_per_block = 2 * (2 * B * L * L          # stacked mean / E[x^2] (patch LN)
                           + B * L * HS + B * HS * L
                           + 2 * B * L * L        # stacked mean / E[x^2] (time LN)
                           + B * L * PH + B * PH * L
                           + B * L * HEAD_W)      # fused backcast/forecast head
    bytes_accessed = sum(int(a.size) * 4 for a in kernel_inputs) + 4 * (B * L + B * F)
    cost = pl.CostEstimate(flops=NUM_BLOCKS * flops_per_block,
                           transcendentals=NUM_BLOCKS * B * (HS + PH),
                           bytes_accessed=bytes_accessed)

    res, fcast = pl.pallas_call(
        seasonality_stack_kernel,
        grid=(1,),                    # whole stack in one grid step
        in_specs=in_specs,
        out_specs=out_specs,
        out_shape=out_shape,
        compiler_params=pltpu.CompilerParams(dimension_semantics=("arbitrary",)),
        cost_estimate=cost,
    )(*kernel_inputs)
    return res, fcast


# ---------------- plain-JAX reference (mirrors the PyTorch forward) -----------
def mixer_block_reference(x, p):
    B, L = x.shape
    P, S = NUM_PATCHES, PATCH_SIZE
    x3 = x.reshape(B, P, S)

    xt = jnp.swapaxes(x3, 1, 2)                              # (B, S, P)
    mu = xt.mean(-1, keepdims=True)
    var = ((xt - mu) ** 2).mean(-1, keepdims=True)
    xn = (xt - mu) / jnp.sqrt(var + LN_EPS) * p["ln1_w"] + p["ln1_b"]
    h = jax.nn.gelu(xn @ p["pm1_w"].T + p["pm1_b"], approximate=False)
    pm = h @ p["pm3_w"].T + p["pm3_b"]
    x3 = x3 + jnp.swapaxes(pm, 1, 2)

    mu2 = x3.mean(-1, keepdims=True)
    var2 = ((x3 - mu2) ** 2).mean(-1, keepdims=True)
    xn2 = (x3 - mu2) / jnp.sqrt(var2 + LN_EPS) * p["ln2_w"] + p["ln2_b"]
    h2 = jax.nn.gelu(xn2 @ p["tm1_w"].T + p["tm1_b"], approximate=False)
    tm = h2 @ p["tm3_w"].T + p["tm3_b"]
    x3 = x3 + tm

    xf = x3.reshape(B, L)
    theta_b = xf @ p["theta_b_w"].T
    theta_f = xf @ p["theta_f_w"].T
    backcast = theta_b @ p["bc_w"].T + p["bc_b"]
    forecast = theta_f @ p["fc_w"].T + p["fc_b"]
    return backcast, forecast


def seasonality_stack_reference(x, params_list):
    forecast = jnp.zeros((x.shape[0], FORECAST_LEN), jnp.float32)
    for p in params_list:
        backcast, f_blk = mixer_block_reference(x, p)
        x = x - backcast
        forecast = forecast + f_blk
    return x, forecast


def init_params(key):
    P, S, H, T, L, F = (NUM_PATCHES, PATCH_SIZE, HIDDEN_DIM, THETAS_DIM,
                        BACKCAST_LEN, FORECAST_LEN)
    ks = jax.random.split(key, 18)

    def nrm(k, shape, scale=0.1):
        return scale * jax.random.normal(k, shape, jnp.float32)

    return {
        # patch_mix: LayerNorm(P), Linear(P,H), GELU, Linear(H,P)
        "ln1_w": jnp.ones((P,), jnp.float32) + nrm(ks[0], (P,)),
        "ln1_b": nrm(ks[1], (P,)),
        "pm1_w": nrm(ks[2], (H, P)), "pm1_b": nrm(ks[3], (H,)),
        "pm3_w": nrm(ks[4], (P, H)), "pm3_b": nrm(ks[5], (P,)),
        # time_mix: LayerNorm(S), Linear(S,H), GELU, Linear(H,S)
        "ln2_w": jnp.ones((S,), jnp.float32) + nrm(ks[6], (S,)),
        "ln2_b": nrm(ks[7], (S,)),
        "tm1_w": nrm(ks[8], (H, S)), "tm1_b": nrm(ks[9], (H,)),
        "tm3_w": nrm(ks[10], (S, H)), "tm3_b": nrm(ks[11], (S,)),
        # heads
        "theta_b_w": nrm(ks[12], (T, L)),
        "theta_f_w": nrm(ks[13], (T, L)),
        "bc_w": nrm(ks[14], (L, T)), "bc_b": nrm(ks[15], (L,)),
        "fc_w": nrm(ks[16], (F, T)), "fc_b": nrm(ks[17], (F,)),
    }


if __name__ == "__main__":
    key = jax.random.PRNGKey(0)
    kx, kp = jax.random.split(key)
    x = jax.random.normal(kx, (BATCH, BACKCAST_LEN), jnp.float32)
    params_list = [init_params(k) for k in jax.random.split(kp, NUM_BLOCKS)]

    slabs = precompute_stack_inputs(params_list)   # one-time weight plumbing
    residual, forecast = seasonality_stack_forward(x, slabs)
    jax.block_until_ready((residual, forecast))

    res_ref, fc_ref = seasonality_stack_reference(x, params_list)
    assert residual.shape == (BATCH, BACKCAST_LEN)
    assert forecast.shape == (BATCH, FORECAST_LEN)
    assert jnp.allclose(residual, res_ref, atol=2e-3, rtol=2e-3), "residual mismatch"
    assert jnp.allclose(forecast, fc_ref, atol=2e-3, rtol=2e-3), "forecast mismatch"

    print("KERNEL_OK")
</pallas_src>

<mosaic_0001>
module attributes {stable_mosaic.version = 11 : i64} {
  func.func @seasonality_stack_kernel(%arg0: i32, %arg1: memref<8x32xf32, #tpu.memory_space<vmem>>, %arg2: memref<2x32x32xf32, #tpu.memory_space<vmem>>, %arg3: memref<3x32x424xf32, #tpu.memory_space<vmem>>, %arg4: memref<3x384x32xf32, #tpu.memory_space<vmem>>, %arg5: memref<3x1x768xf32, #tpu.memory_space<vmem>>, %arg6: memref<8x32xf32, #tpu.memory_space<vmem>>, %arg7: memref<8x8xf32, #tpu.memory_space<vmem>>) attributes {dimension_semantics = [#tpu.dimension_semantics<arbitrary>], iteration_bounds = array<i64: 1>, scalar_prefetch = 0 : i64, scratch_operands = 0 : i64, tpu.core_type = #tpu.core_type<tc>, window_params = [{pipeline_mode = #tpu.pipeline_mode<synchronous>, transform_indices = @transform_0, window_bounds = array<i64: 8, 32>}, {pipeline_mode = #tpu.pipeline_mode<synchronous>, transform_indices = @transform_1, window_bounds = array<i64: 2, 32, 32>}, {pipeline_mode = #tpu.pipeline_mode<synchronous>, transform_indices = @transform_2, window_bounds = array<i64: 3, 32, 424>}, {pipeline_mode = #tpu.pipeline_mode<synchronous>, transform_indices = @transform_3, window_bounds = array<i64: 3, 384, 32>}, {pipeline_mode = #tpu.pipeline_mode<synchronous>, transform_indices = @transform_4, window_bounds = array<i64: 3, 1, 768>}, {pipeline_mode = #tpu.pipeline_mode<synchronous>, transform_indices = @transform_5, window_bounds = array<i64: 8, 32>}, {pipeline_mode = #tpu.pipeline_mode<synchronous>, transform_indices = @transform_6, window_bounds = array<i64: 8, 8>}]} {
    %c0 = arith.constant 0 : index
    %c0_0 = arith.constant 0 : index
    %c0_1 = arith.constant 0 : index
    %0 = vector.load %arg2[%c0, %c0_0, %c0_1] : memref<2x32x32xf32, #tpu.memory_space<vmem>>, vector<1x32x32xf32>
    %1 = vector.shape_cast %0 : vector<1x32x32xf32> to vector<32x32xf32>
    %c1 = arith.constant 1 : index
    %c0_2 = arith.constant 0 : index
    %c0_3 = arith.constant 0 : index
    %2 = vector.load %arg2[%c1, %c0_2, %c0_3] : memref<2x32x32xf32, #tpu.memory_space<vmem>>, vector<1x32x32xf32>
    %3 = vector.shape_cast %2 : vector<1x32x32xf32> to vector<32x32xf32>
    %c0_4 = arith.constant 0 : index
    %c0_5 = arith.constant 0 : index
    %4 = vector.load %arg1[%c0_4, %c0_5] : memref<8x32xf32, #tpu.memory_space<vmem>>, vector<8x32xf32>
    %cst = arith.constant 0.000000e+00 : f32
    %5 = vector.broadcast %cst : f32 to vector<8x8xf32>
    %c0_6 = arith.constant 0 : index
    %c0_7 = arith.constant 0 : index
    %c0_8 = arith.constant 0 : index
    %6 = vector.load %arg3[%c0_6, %c0_7, %c0_8] : memref<3x32x424xf32, #tpu.memory_space<vmem>>, vector<1x32x256xf32>
    %7 = vector.shape_cast %6 : vector<1x32x256xf32> to vector<32x256xf32>
    %c0_9 = arith.constant 0 : index
    %c0_10 = arith.constant 0 : index
    %c256 = arith.constant 256 : index
    %8 = vector.load %arg3[%c0_9, %c0_10, %c256] : memref<3x32x424xf32, #tpu.memory_space<vmem>>, vector<1x32x128xf32>
    %9 = vector.shape_cast %8 : vector<1x32x128xf32> to vector<32x128xf32>
    %c0_11 = arith.constant 0 : index
    %c0_12 = arith.constant 0 : index
    %c384 = arith.constant 384 : index
    %10 = vector.load %arg3[%c0_11, %c0_12, %c384] : memref<3x32x424xf32, #tpu.memory_space<vmem>>, vector<1x32x40xf32>
    %11 = vector.shape_cast %10 : vector<1x32x40xf32> to vector<32x40xf32>
    %c0_13 = arith.constant 0 : index
    %c0_14 = arith.constant 0 : index
    %c0_15 = arith.constant 0 : index
    %12 = vector.load %arg4[%c0_13, %c0_14, %c0_15] : memref<3x384x32xf32, #tpu.memory_space<vmem>>, vector<1x256x32xf32>
    %13 = vector.shape_cast %12 : vector<1x256x32xf32> to vector<256x32xf32>
    %c0_16 = arith.constant 0 : index
    %c256_17 = arith.constant 256 : index
    %c0_18 = arith.constant 0 : index
    %14 = vector.load %arg4[%c0_16, %c256_17, %c0_18] : memref<3x384x32xf32, #tpu.memory_space<vmem>>, vector<1x128x32xf32>
    %15 = vector.shape_cast %14 : vector<1x128x32xf32> to vector<128x32xf32>
    %c0_19 = arith.constant 0 : index
    %c0_20 = arith.constant 0 : index
    %c0_21 = arith.constant 0 : index
    %16 = vector.load %arg5[%c0_19, %c0_20, %c0_21] : memref<3x1x768xf32, #tpu.memory_space<vmem>>, vector<1x1x256xf32>
    %17 = vector.shape_cast %16 : vector<1x1x256xf32> to vector<1x256xf32>
    %c0_22 = arith.constant 0 : index
    %c0_23 = arith.constant 0 : index
    %c256_24 = arith.constant 256 : index
    %18 = vector.load %arg5[%c0_22, %c0_23, %c256_24] : memref<3x1x768xf32, #tpu.memory_space<vmem>>, vector<1x1x128xf32>
    %19 = vector.shape_cast %18 : vector<1x1x128xf32> to vector<1x128xf32>
    %c0_25 = arith.constant 0 : index
    %c0_26 = arith.constant 0 : index
    %c384_27 = arith.constant 384 : index
    %20 = vector.load %arg5[%c0_25, %c0_26, %c384_27] : memref<3x1x768xf32, #tpu.memory_space<vmem>>, vector<1x1x32xf32>
    %21 = vector.shape_cast %20 : vector<1x1x32xf32> to vector<1x32xf32>
    %c0_28 = arith.constant 0 : index
    %c0_29 = arith.constant 0 : index
    %c512 = arith.constant 512 : index
    %22 = vector.load %arg5[%c0_28, %c0_29, %c512] : memref<3x1x768xf32, #tpu.memory_space<vmem>>, vector<1x1x32xf32>
    %23 = vector.shape_cast %22 : vector<1x1x32xf32> to vector<1x32xf32>
    %c0_30 = arith.constant 0 : index
    %c0_31 = arith.constant 0 : index
    %c640 = arith.constant 640 : index
    %24 = vector.load %arg5[%c0_30, %c0_31, %c640] : memref<3x1x768xf32, #tpu.memory_space<vmem>>, vector<1x1x40xf32>
    %25 = vector.shape_cast %24 : vector<1x1x40xf32> to vector<1x40xf32>
    %26 = arith.mulf %4, %4 : vector<8x32xf32>
    %27 = tpu.concatenate %4, %26 in 0 : vector<8x32xf32>, vector<8x32xf32> -> vector<16x32xf32>
    %cst_32 = arith.constant dense<0.000000e+00> : vector<16x32xf32>
    %28 = tpu.matmul %27, %1, %cst_32 {dimension_numbers = #tpu.dot_dimension_numbers<[1], [0], [0], [1], [0, 0, 1, 1], [], []>} : vector<16x32xf32>, vector<32x32xf32>, vector<16x32xf32> -> vector<16x32xf32>
    %29 = vector.extract_strided_slice %28 {offsets = [0, 0], sizes = [8, 32], strides = [1, 1]} : vector<16x32xf32> to vector<8x32xf32>
    %30 = vector.extract_strided_slice %28 {offsets = [8, 0], sizes = [8, 32], strides = [1, 1]} : vector<16x32xf32> to vector<8x32xf32>
    %31 = arith.subf %4, %29 : vector<8x32xf32>
    %32 = arith.mulf %29, %29 : vector<8x32xf32>
    %33 = arith.subf %30, %32 : vector<8x32xf32>
    %cst_33 = arith.constant 9.99999974E-6 : f32
    %34 = vector.broadcast %cst_33 : f32 to vector<8x32xf32>
    %35 = arith.addf %33, %34 : vector<8x32xf32>
    %36 = math.rsqrt %35 : vector<8x32xf32>
    %37 = arith.mulf %31, %36 : vector<8x32xf32>
    %cst_34 = arith.constant dense<0.000000e+00> : vector<8x256xf32>
    %38 = tpu.matmul %37, %7, %cst_34 {dimension_numbers = #tpu.dot_dimension_numbers<[1], [0], [0], [1], [0, 0, 1, 1], [], []>} : vector<8x32xf32>, vector<32x256xf32>, vector<8x256xf32> -> vector<8x256xf32>
    %39 = vector.broadcast %17 : vector<1x256xf32> to vector<8x256xf32>
    %40 = arith.addf %38, %39 : vector<8x256xf32>
    %cst_35 = arith.constant 0.707106769 : f32
    %41 = vector.broadcast %cst_35 : f32 to vector<8x256xf32>
    %42 = arith.mulf %40, %41 : vector<8x256xf32>
    %43 = math.absf %42 : vector<8x256xf32>
    %cst_36 = arith.constant 0.327591091 : f32
    %44 = vector.broadcast %cst_36 : f32 to vector<8x256xf32>
    %45 = arith.mulf %44, %43 : vector<8x256xf32>
    %cst_37 = arith.constant 1.000000e+00 : f32
    %46 = vector.broadcast %cst_37 : f32 to vector<8x256xf32>
    %47 = arith.addf %46, %45 : vector<8x256xf32>
    %cst_38 = arith.constant 1.000000e+00 : f32
    %48 = vector.broadcast %cst_38 : f32 to vector<8x256xf32>
    %49 = arith.divf %48, %47 : vector<8x256xf32>
    %cst_39 = arith.constant 1.06140542 : f32
    %50 = vector.broadcast %cst_39 : f32 to vector<8x256xf32>
    %51 = arith.mulf %49, %50 : vector<8x256xf32>
    %cst_40 = arith.constant -1.45315206 : f32
    %52 = vector.broadcast %cst_40 : f32 to vector<8x256xf32>
    %53 = arith.addf %52, %51 : vector<8x256xf32>
    %54 = arith.mulf %49, %53 : vector<8x256xf32>
    %cst_41 = arith.constant 1.42141378 : f32
    %55 = vector.broadcast %cst_41 : f32 to vector<8x256xf32>
    %56 = arith.addf %55, %54 : vector<8x256xf32>
    %57 = arith.mulf %49, %56 : vector<8x256xf32>
    %cst_42 = arith.constant -0.284496725 : f32
    %58 = vector.broadcast %cst_42 : f32 to vector<8x256xf32>
    %59 = arith.addf %58, %57 : vector<8x256xf32>
    %60 = arith.mulf %49, %59 : vector<8x256xf32>
    %cst_43 = arith.constant 0.254829586 : f32
    %61 = vector.broadcast %cst_43 : f32 to vector<8x256xf32>
    %62 = arith.addf %61, %60 : vector<8x256xf32>
    %63 = arith.mulf %49, %62 : vector<8x256xf32>
    %cst_44 = arith.constant 0.000000e+00 : f32
    %64 = vector.broadcast %cst_44 : f32 to vector<8x256xf32>
    %65 = arith.subf %64, %43 : vector<8x256xf32>
    %66 = arith.mulf %65, %43 : vector<8x256xf32>
    %67 = math.exp %66 : vector<8x256xf32>
    %68 = arith.mulf %63, %67 : vector<8x256xf32>
    %cst_45 = arith.constant 1.000000e+00 : f32
    %69 = vector.broadcast %cst_45 : f32 to vector<8x256xf32>
    %70 = arith.subf %69, %68 : vector<8x256xf32>
    %cst_46 = arith.constant 0.000000e+00 : f32
    %71 = vector.broadcast %cst_46 : f32 to vector<8x256xf32>
    %72 = arith.cmpf oge, %42, %71 : vector<8x256xf32>
    %cst_47 = arith.constant 0.000000e+00 : f32
    %73 = vector.broadcast %cst_47 : f32 to vector<8x256xf32>
    %74 = arith.subf %73, %70 : vector<8x256xf32>
    %75 = arith.select %72, %70, %74 : vector<8x256xi1>, vector<8x256xf32>
    %cst_48 = arith.constant 5.000000e-01 : f32
    %76 = vector.broadcast %cst_48 : f32 to vector<8x256xf32>
    %77 = arith.mulf %76, %40 : vector<8x256xf32>
    %cst_49 = arith.constant 1.000000e+00 : f32
    %78 = vector.broadcast %cst_49 : f32 to vector<8x256xf32>
    %79 = arith.addf %78, %75 : vector<8x256xf32>
    %80 = arith.mulf %77, %79 : vector<8x256xf32>
    %cst_50 = arith.constant dense<0.000000e+00> : vector<8x32xf32>
    %81 = tpu.matmul %80, %13, %cst_50 {dimension_numbers = #tpu.dot_dimension_numbers<[1], [0], [0], [1], [0, 0, 1, 1], [], []>} : vector<8x256xf32>, vector<256x32xf32>, vector<8x32xf32> -> vector<8x32xf32>
    %82 = arith.addf %4, %81 : vector<8x32xf32>
    %83 = vector.broadcast %21 : vector<1x32xf32> to vector<8x32xf32>
    %84 = arith.addf %82, %83 : vector<8x32xf32>
    %85 = arith.mulf %84, %84 : vector<8x32xf32>
    %86 = tpu.concatenate %84, %85 in 0 : vector<8x32xf32>, vector<8x32xf32> -> vector<16x32xf32>
    %cst_51 = arith.constant dense<0.000000e+00> : vector<16x32xf32>
    %87 = tpu.matmul %86, %3, %cst_51 {dimension_numbers = #tpu.dot_dimension_numbers<[1], [0], [0], [1], [0, 0, 1, 1], [], []>} : vector<16x32xf32>, vector<32x32xf32>, vector<16x32xf32> -> vector<16x32xf32>
    %88 = vector.extract_strided_slice %87 {offsets = [0, 0], sizes = [8, 32], strides = [1, 1]} : vector<16x32xf32> to vector<8x32xf32>
    %89 = vector.extract_strided_slice %87 {offsets = [8, 0], sizes = [8, 32], strides = [1, 1]} : vector<16x32xf32> to vector<8x32xf32>
    %90 = arith.subf %84, %88 : vector<8x32xf32>
    %91 = arith.mulf %88, %88 : vector<8x32xf32>
    %92 = arith.subf %89, %91 : vector<8x32xf32>
    %cst_52 = arith.constant 9.99999974E-6 : f32
    %93 = vector.broadcast %cst_52 : f32 to vector<8x32xf32>
    %94 = arith.addf %92, %93 : vector<8x32xf32>
    %95 = math.rsqrt %94 : vector<8x32xf32>
    %96 = arith.mulf %90, %95 : vector<8x32xf32>
    %cst_53 = arith.constant dense<0.000000e+00> : vector<8x128xf32>
    %97 = tpu.matmul %96, %9, %cst_53 {dimension_numbers = #tpu.dot_dimension_numbers<[1], [0], [0], [1], [0, 0, 1, 1], [], []>} : vector<8x32xf32>, vector<32x128xf32>, vector<8x128xf32> -> vector<8x128xf32>
    %98 = vector.broadcast %19 : vector<1x128xf32> to vector<8x128xf32>
    %99 = arith.addf %97, %98 : vector<8x128xf32>
    %cst_54 = arith.constant 0.707106769 : f32
    %100 = vector.broadcast %cst_54 : f32 to vector<8x128xf32>
    %101 = arith.mulf %99, %100 : vector<8x128xf32>
    %102 = math.absf %101 : vector<8x128xf32>
    %cst_55 = arith.constant 0.327591091 : f32
    %103 = vector.broadcast %cst_55 : f32 to vector<8x128xf32>
    %104 = arith.mulf %103, %102 : vector<8x128xf32>
    %cst_56 = arith.constant 1.000000e+00 : f32
    %105 = vector.broadcast %cst_56 : f32 to vector<8x128xf32>
    %106 = arith.addf %105, %104 : vector<8x128xf32>
    %cst_57 = arith.constant 1.000000e+00 : f32
    %107 = vector.broadcast %cst_57 : f32 to vector<8x128xf32>
    %108 = arith.divf %107, %106 : vector<8x128xf32>
    %cst_58 = arith.constant 1.06140542 : f32
    %109 = vector.broadcast %cst_58 : f32 to vector<8x128xf32>
    %110 = arith.mulf %108, %109 : vector<8x128xf32>
    %cst_59 = arith.constant -1.45315206 : f32
    %111 = vector.broadcast %cst_59 : f32 to vector<8x128xf32>
    %112 = arith.addf %111, %110 : vector<8x128xf32>
    %113 = arith.mulf %108, %112 : vector<8x128xf32>
    %cst_60 = arith.constant 1.42141378 : f32
    %114 = vector.broadcast %cst_60 : f32 to vector<8x128xf32>
    %115 = arith.addf %114, %113 : vector<8x128xf32>
    %116 = arith.mulf %108, %115 : vector<8x128xf32>
    %cst_61 = arith.constant -0.284496725 : f32
    %117 = vector.broadcast %cst_61 : f32 to vector<8x128xf32>
    %118 = arith.addf %117, %116 : vector<8x128xf32>
    %119 = arith.mulf %108, %118 : vector<8x128xf32>
    %cst_62 = arith.constant 0.254829586 : f32
    %120 = vector.broadcast %cst_62 : f32 to vector<8x128xf32>
    %121 = arith.addf %120, %119 : vector<8x128xf32>
    %122 = arith.mulf %108, %121 : vector<8x128xf32>
    %cst_63 = arith.constant 0.000000e+00 : f32
    %123 = vector.broadcast %cst_63 : f32 to vector<8x128xf32>
    %124 = arith.subf %123, %102 : vector<8x128xf32>
    %125 = arith.mulf %124, %102 : vector<8x128xf32>
    %126 = math.exp %125 : vector<8x128xf32>
    %127 = arith.mulf %122, %126 : vector<8x128xf32>
    %cst_64 = arith.constant 1.000000e+00 : f32
    %128 = vector.broadcast %cst_64 : f32 to vector<8x128xf32>
    %129 = arith.subf %128, %127 : vector<8x128xf32>
    %cst_65 = arith.constant 0.000000e+00 : f32
    %130 = vector.broadcast %cst_65 : f32 to vector<8x128xf32>
    %131 = arith.cmpf oge, %101, %130 : vector<8x128xf32>
    %cst_66 = arith.constant 0.000000e+00 : f32
    %132 = vector.broadcast %cst_66 : f32 to vector<8x128xf32>
    %133 = arith.subf %132, %129 : vector<8x128xf32>
    %134 = arith.select %131, %129, %133 : vector<8x128xi1>, vector<8x128xf32>
    %cst_67 = arith.constant 5.000000e-01 : f32
    %135 = vector.broadcast %cst_67 : f32 to vector<8x128xf32>
    %136 = arith.mulf %135, %99 : vector<8x128xf32>
    %cst_68 = arith.constant 1.000000e+00 : f32
    %137 = vector.broadcast %cst_68 : f32 to vector<8x128xf32>
    %138 = arith.addf %137, %134 : vector<8x128xf32>
    %139 = arith.mulf %136, %138 : vector<8x128xf32>
    %cst_69 = arith.constant dense<0.000000e+00> : vector<8x32xf32>
    %140 = tpu.matmul %139, %15, %cst_69 {dimension_numbers = #tpu.dot_dimension_numbers<[1], [0], [0], [1], [0, 0, 1, 1], [], []>} : vector<8x128xf32>, vector<128x32xf32>, vector<8x32xf32> -> vector<8x32xf32>
    %141 = arith.addf %84, %140 : vector<8x32xf32>
    %142 = vector.broadcast %23 : vector<1x32xf32> to vector<8x32xf32>
    %143 = arith.addf %141, %142 : vector<8x32xf32>
    %cst_70 = arith.constant dense<0.000000e+00> : vector<8x40xf32>
    %144 = tpu.matmul %143, %11, %cst_70 {dimension_numbers = #tpu.dot_dimension_numbers<[1], [0], [0], [1], [0, 0, 1, 1], [], []>} : vector<8x32xf32>, vector<32x40xf32>, vector<8x40xf32> -> vector<8x40xf32>
    %145 = vector.broadcast %25 : vector<1x40xf32> to vector<8x40xf32>
    %146 = arith.addf %144, %145 : vector<8x40xf32>
    %147 = vector.extract_strided_slice %146 {offsets = [0, 0], sizes = [8, 32], strides = [1, 1]} : vector<8x40xf32> to vector<8x32xf32>
    %148 = arith.subf %4, %147 : vector<8x32xf32>
    %149 = vector.extract_strided_slice %146 {offsets = [0, 32], sizes = [8, 8], strides = [1, 1]} : vector<8x40xf32> to vector<8x8xf32>
    %150 = arith.addf %5, %149 : vector<8x8xf32>
    %c1_71 = arith.constant 1 : index
    %c0_72 = arith.constant 0 : index
    %c0_73 = arith.constant 0 : index
    %151 = vector.load %arg3[%c1_71, %c0_72, %c0_73] : memref<3x32x424xf32, #tpu.memory_space<vmem>>, vector<1x32x256xf32>
    %152 = vector.shape_cast %151 : vector<1x32x256xf32> to vector<32x256xf32>
    %c1_74 = arith.constant 1 : index
    %c0_75 = arith.constant 0 : index
    %c256_76 = arith.constant 256 : index
    %153 = vector.load %arg3[%c1_74, %c0_75, %c256_76] : memref<3x32x424xf32, #tpu.memory_space<vmem>>, vector<1x32x128xf32>
    %154 = vector.shape_cast %153 : vector<1x32x128xf32> to vector<32x128xf32>
    %c1_77 = arith.constant 1 : index
    %c0_78 = arith.constant 0 : index
    %c384_79 = arith.constant 384 : index
    %155 = vector.load %arg3[%c1_77, %c0_78, %c384_79] : memref<3x32x424xf32, #tpu.memory_space<vmem>>, vector<1x32x40xf32>
    %156 = vector.shape_cast %155 : vector<1x32x40xf32> to vector<32x40xf32>
    %c1_80 = arith.constant 1 : index
    %c0_81 = arith.constant 0 : index
    %c0_82 = arith.constant 0 : index
    %157 = vector.load %arg4[%c1_80, %c0_81, %c0_82] : memref<3x384x32xf32, #tpu.memory_space<vmem>>, vector<1x256x32xf32>
    %158 = vector.shape_cast %157 : vector<1x256x32xf32> to vector<256x32xf32>
    %c1_83 = arith.constant 1 : index
    %c256_84 = arith.constant 256 : index
    %c0_85 = arith.constant 0 : index
    %159 = vector.load %arg4[%c1_83, %c256_84, %c0_85] : memref<3x384x32xf32, #tpu.memory_space<vmem>>, vector<1x128x32xf32>
    %160 = vector.shape_cast %159 : vector<1x128x32xf32> to vector<128x32xf32>
    %c1_86 = arith.constant 1 : index
    %c0_87 = arith.constant 0 : index
    %c0_88 = arith.constant 0 : index
    %161 = vector.load %arg5[%c1_86, %c0_87, %c0_88] : memref<3x1x768xf32, #tpu.memory_space<vmem>>, vector<1x1x256xf32>
    %162 = vector.shape_cast %161 : vector<1x1x256xf32> to vector<1x256xf32>
    %c1_89 = arith.constant 1 : index
    %c0_90 = arith.constant 0 : index
    %c256_91 = arith.constant 256 : index
    %163 = vector.load %arg5[%c1_89, %c0_90, %c256_91] : memref<3x1x768xf32, #tpu.memory_space<vmem>>, vector<1x1x128xf32>
    %164 = vector.shape_cast %163 : vector<1x1x128xf32> to vector<1x128xf32>
    %c1_92 = arith.constant 1 : index
    %c0_93 = arith.constant 0 : index
    %c384_94 = arith.constant 384 : index
    %165 = vector.load %arg5[%c1_92, %c0_93, %c384_94] : memref<3x1x768xf32, #tpu.memory_space<vmem>>, vector<1x1x32xf32>
    %166 = vector.shape_cast %165 : vector<1x1x32xf32> to vector<1x32xf32>
    %c1_95 = arith.constant 1 : index
    %c0_96 = arith.constant 0 : index
    %c512_97 = arith.constant 512 : index
    %167 = vector.load %arg5[%c1_95, %c0_96, %c512_97] : memref<3x1x768xf32, #tpu.memory_space<vmem>>, vector<1x1x32xf32>
    %168 = vector.shape_cast %167 : vector<1x1x32xf32> to vector<1x32xf32>
    %c1_98 = arith.constant 1 : index
    %c0_99 = arith.constant 0 : index
    %c640_100 = arith.constant 640 : index
    %169 = vector.load %arg5[%c1_98, %c0_99, %c640_100] : memref<3x1x768xf32, #tpu.memory_space<vmem>>, vector<1x1x40xf32>
    %170 = vector.shape_cast %169 : vector<1x1x40xf32> to vector<1x40xf32>
    %171 = arith.mulf %148, %148 : vector<8x32xf32>
    %172 = tpu.concatenate %148, %171 in 0 : vector<8x32xf32>, vector<8x32xf32> -> vector<16x32xf32>
    %cst_101 = arith.constant dense<0.000000e+00> : vector<16x32xf32>
    %173 = tpu.matmul %172, %1, %cst_101 {dimension_numbers = #tpu.dot_dimension_numbers<[1], [0], [0], [1], [0, 0, 1, 1], [], []>} : vector<16x32xf32>, vector<32x32xf32>, vector<16x32xf32> -> vector<16x32xf32>
    %174 = vector.extract_strided_slice %173 {offsets = [0, 0], sizes = [8, 32], strides = [1, 1]} : vector<16x32xf32> to vector<8x32xf32>
    %175 = vector.extract_strided_slice %173 {offsets = [8, 0], sizes = [8, 32], strides = [1, 1]} : vector<16x32xf32> to vector<8x32xf32>
    %176 = arith.subf %148, %174 : vector<8x32xf32>
    %177 = arith.mulf %174, %174 : vector<8x32xf32>
    %178 = arith.subf %175, %177 : vector<8x32xf32>
    %cst_102 = arith.constant 9.99999974E-6 : f32
    %179 = vector.broadcast %cst_102 : f32 to vector<8x32xf32>
    %180 = arith.addf %178, %179 : vector<8x32xf32>
    %181 = math.rsqrt %180 : vector<8x32xf32>
    %182 = arith.mulf %176, %181 : vector<8x32xf32>
    %cst_103 = arith.constant dense<0.000000e+00> : vector<8x256xf32>
    %183 = tpu.matmul %182, %152, %cst_103 {dimension_numbers = #tpu.dot_dimension_numbers<[1], [0], [0], [1], [0, 0, 1, 1], [], []>} : vector<8x32xf32>, vector<32x256xf32>, vector<8x256xf32> -> vector<8x256xf32>
    %184 = vector.broadcast %162 : vector<1x256xf32> to vector<8x256xf32>
    %185 = arith.addf %183, %184 : vector<8x256xf32>
    %cst_104 = arith.constant 0.707106769 : f32
    %186 = vector.broadcast %cst_104 : f32 to vector<8x256xf32>
    %187 = arith.mulf %185, %186 : vector<8x256xf32>
    %188 = math.absf %187 : vector<8x256xf32>
    %cst_105 = arith.constant 0.327591091 : f32
    %189 = vector.broadcast %cst_105 : f32 to vector<8x256xf32>
    %190 = arith.mulf %189, %188 : vector<8x256xf32>
    %cst_106 = arith.constant 1.000000e+00 : f32
    %191 = vector.broadcast %cst_106 : f32 to vector<8x256xf32>
    %192 = arith.addf %191, %190 : vector<8x256xf32>
    %cst_107 = arith.constant 1.000000e+00 : f32
    %193 = vector.broadcast %cst_107 : f32 to vector<8x256xf32>
    %194 = arith.divf %193, %192 : vector<8x256xf32>
    %cst_108 = arith.constant 1.06140542 : f32
    %195 = vector.broadcast %cst_108 : f32 to vector<8x256xf32>
    %196 = arith.mulf %194, %195 : vector<8x256xf32>
    %cst_109 = arith.constant -1.45315206 : f32
    %197 = vector.broadcast %cst_109 : f32 to vector<8x256xf32>
    %198 = arith.addf %197, %196 : vector<8x256xf32>
    %199 = arith.mulf %194, %198 : vector<8x256xf32>
    %cst_110 = arith.constant 1.42141378 : f32
    %200 = vector.broadcast %cst_110 : f32 to vector<8x256xf32>
    %201 = arith.addf %200, %199 : vector<8x256xf32>
    %202 = arith.mulf %194, %201 : vector<8x256xf32>
    %cst_111 = arith.constant -0.284496725 : f32
    %203 = vector.broadcast %cst_111 : f32 to vector<8x256xf32>
    %204 = arith.addf %203, %202 : vector<8x256xf32>
    %205 = arith.mulf %194, %204 : vector<8x256xf32>
    %cst_112 = arith.constant 0.254829586 : f32
    %206 = vector.broadcast %cst_112 : f32 to vector<8x256xf32>
    %207 = arith.addf %206, %205 : vector<8x256xf32>
    %208 = arith.mulf %194, %207 : vector<8x256xf32>
    %cst_113 = arith.constant 0.000000e+00 : f32
    %209 = vector.broadcast %cst_113 : f32 to vector<8x256xf32>
    %210 = arith.subf %209, %188 : vector<8x256xf32>
    %211 = arith.mulf %210, %188 : vector<8x256xf32>
    %212 = math.exp %211 : vector<8x256xf32>
    %213 = arith.mulf %208, %212 : vector<8x256xf32>
    %cst_114 = arith.constant 1.000000e+00 : f32
    %214 = vector.broadcast %cst_114 : f32 to vector<8x256xf32>
    %215 = arith.subf %214, %213 : vector<8x256xf32>
    %cst_115 = arith.constant 0.000000e+00 : f32
    %216 = vector.broadcast %cst_115 : f32 to vector<8x256xf32>
    %217 = arith.cmpf oge, %187, %216 : vector<8x256xf32>
    %cst_116 = arith.constant 0.000000e+00 : f32
    %218 = vector.broadcast %cst_116 : f32 to vector<8x256xf32>
    %219 = arith.subf %218, %215 : vector<8x256xf32>
    %220 = arith.select %217, %215, %219 : vector<8x256xi1>, vector<8x256xf32>
    %cst_117 = arith.constant 5.000000e-01 : f32
    %221 = vector.broadcast %cst_117 : f32 to vector<8x256xf32>
    %222 = arith.mulf %221, %185 : vector<8x256xf32>
    %cst_118 = arith.constant 1.000000e+00 : f32
    %223 = vector.broadcast %cst_118 : f32 to vector<8x256xf32>
    %224 = arith.addf %223, %220 : vector<8x256xf32>
    %225 = arith.mulf %222, %224 : vector<8x256xf32>
    %cst_119 = arith.constant dense<0.000000e+00> : vector<8x32xf32>
    %226 = tpu.matmul %225, %158, %cst_119 {dimension_numbers = #tpu.dot_dimension_numbers<[1], [0], [0], [1], [0, 0, 1, 1], [], []>} : vector<8x256xf32>, vector<256x32xf32>, vector<8x32xf32> -> vector<8x32xf32>
    %227 = arith.addf %148, %226 : vector<8x32xf32>
    %228 = vector.broadcast %166 : vector<1x32xf32> to vector<8x32xf32>
    %229 = arith.addf %227, %228 : vector<8x32xf32>
    %230 = arith.mulf %229, %229 : vector<8x32xf32>
    %231 = tpu.concatenate %229, %230 in 0 : vector<8x32xf32>, vector<8x32xf32> -> vector<16x32xf32>
    %cst_120 = arith.constant dense<0.000000e+00> : vector<16x32xf32>
    %232 = tpu.matmul %231, %3, %cst_120 {dimension_numbers = #tpu.dot_dimension_numbers<[1], [0], [0], [1], [0, 0, 1, 1], [], []>} : vector<16x32xf32>, vector<32x32xf32>, vector<16x32xf32> -> vector<16x32xf32>
    %233 = vector.extract_strided_slice %232 {offsets = [0, 0], sizes = [8, 32], strides = [1, 1]} : vector<16x32xf32> to vector<8x32xf32>
    %234 = vector.extract_strided_slice %232 {offsets = [8, 0], sizes = [8, 32], strides = [1, 1]} : vector<16x32xf32> to vector<8x32xf32>
    %235 = arith.subf %229, %233 : vector<8x32xf32>
    %236 = arith.mulf %233, %233 : vector<8x32xf32>
    %237 = arith.subf %234, %236 : vector<8x32xf32>
    %cst_121 = arith.constant 9.99999974E-6 : f32
    %238 = vector.broadcast %cst_121 : f32 to vector<8x32xf32>
    %239 = arith.addf %237, %238 : vector<8x32xf32>
    %240 = math.rsqrt %239 : vector<8x32xf32>
    %241 = arith.mulf %235, %240 : vector<8x32xf32>
    %cst_122 = arith.constant dense<0.000000e+00> : vector<8x128xf32>
    %242 = tpu.matmul %241, %154, %cst_122 {dimension_numbers = #tpu.dot_dimension_numbers<[1], [0], [0], [1], [0, 0, 1, 1], [], []>} : vector<8x32xf32>, vector<32x128xf32>, vector<8x128xf32> -> vector<8x128xf32>
    %243 = vector.broadcast %164 : vector<1x128xf32> to vector<8x128xf32>
    %244 = arith.addf %242, %243 : vector<8x128xf32>
    %cst_123 = arith.constant 0.707106769 : f32
    %245 = vector.broadcast %cst_123 : f32 to vector<8x128xf32>
    %246 = arith.mulf %244, %245 : vector<8x128xf32>
    %247 = math.absf %246 : vector<8x128xf32>
    %cst_124 = arith.constant 0.327591091 : f32
    %248 = vector.broadcast %cst_124 : f32 to vector<8x128xf32>
    %249 = arith.mulf %248, %247 : vector<8x128xf32>
    %cst_125 = arith.constant 1.000000e+00 : f32
    %250 = vector.broadcast %cst_125 : f32 to vector<8x128xf32>
    %251 = arith.addf %250, %249 : vector<8x128xf32>
    %cst_126 = arith.constant 1.000000e+00 : f32
    %252 = vector.broadcast %cst_126 : f32 to vector<8x128xf32>
    %253 = arith.divf %252, %251 : vector<8x128xf32>
    %cst_127 = arith.constant 1.06140542 : f32
    %254 = vector.broadcast %cst_127 : f32 to vector<8x128xf32>
    %255 = arith.mulf %253, %254 : vector<8x128xf32>
    %cst_128 = arith.constant -1.45315206 : f32
    %256 = vector.broadcast %cst_128 : f32 to vector<8x128xf32>
    %257 = arith.addf %256, %255 : vector<8x128xf32>
    %258 = arith.mulf %253, %257 : vector<8x128xf32>
    %cst_129 = arith.constant 1.42141378 : f32
    %259 = vector.broadcast %cst_129 : f32 to vector<8x128xf32>
    %260 = arith.addf %259, %258 : vector<8x128xf32>
    %261 = arith.mulf %253, %260 : vector<8x128xf32>
    %cst_130 = arith.constant -0.284496725 : f32
    %262 = vector.broadcast %cst_130 : f32 to vector<8x128xf32>
    %263 = arith.addf %262, %261 : vector<8x128xf32>
    %264 = arith.mulf %253, %263 : vector<8x128xf32>
    %cst_131 = arith.constant 0.254829586 : f32
    %265 = vector.broadcast %cst_131 : f32 to vector<8x128xf32>
    %266 = arith.addf %265, %264 : vector<8x128xf32>
    %267 = arith.mulf %253, %266 : vector<8x128xf32>
    %cst_132 = arith.constant 0.000000e+00 : f32
    %268 = vector.broadcast %cst_132 : f32 to vector<8x128xf32>
    %269 = arith.subf %268, %247 : vector<8x128xf32>
    %270 = arith.mulf %269, %247 : vector<8x128xf32>
    %271 = math.exp %270 : vector<8x128xf32>
    %272 = arith.mulf %267, %271 : vector<8x128xf32>
    %cst_133 = arith.constant 1.000000e+00 : f32
    %273 = vector.broadcast %cst_133 : f32 to vector<8x128xf32>
    %274 = arith.subf %273, %272 : vector<8x128xf32>
    %cst_134 = arith.constant 0.000000e+00 : f32
    %275 = vector.broadcast %cst_134 : f32 to vector<8x128xf32>
    %276 = arith.cmpf oge, %246, %275 : vector<8x128xf32>
    %cst_135 = arith.constant 0.000000e+00 : f32
    %277 = vector.broadcast %cst_135 : f32 to vector<8x128xf32>
    %278 = arith.subf %277, %274 : vector<8x128xf32>
    %279 = arith.select %276, %274, %278 : vector<8x128xi1>, vector<8x128xf32>
    %cst_136 = arith.constant 5.000000e-01 : f32
    %280 = vector.broadcast %cst_136 : f32 to vector<8x128xf32>
    %281 = arith.mulf %280, %244 : vector<8x128xf32>
    %cst_137 = arith.constant 1.000000e+00 : f32
    %282 = vector.broadcast %cst_137 : f32 to vector<8x128xf32>
    %283 = arith.addf %282, %279 : vector<8x128xf32>
    %284 = arith.mulf %281, %283 : vector<8x128xf32>
    %cst_138 = arith.constant dense<0.000000e+00> : vector<8x32xf32>
    %285 = tpu.matmul %284, %160, %cst_138 {dimension_numbers = #tpu.dot_dimension_numbers<[1], [0], [0], [1], [0, 0, 1, 1], [], []>} : vector<8x128xf32>, vector<128x32xf32>, vector<8x32xf32> -> vector<8x32xf32>
    %286 = arith.addf %229, %285 : vector<8x32xf32>
    %287 = vector.broadcast %168 : vector<1x32xf32> to vector<8x32xf32>
    %288 = arith.addf %286, %287 : vector<8x32xf32>
    %cst_139 = arith.constant dense<0.000000e+00> : vector<8x40xf32>
    %289 = tpu.matmul %288, %156, %cst_139 {dimension_numbers = #tpu.dot_dimension_numbers<[1], [0], [0], [1], [0, 0, 1, 1], [], []>} : vector<8x32xf32>, vector<32x40xf32>, vector<8x40xf32> -> vector<8x40xf32>
    %290 = vector.broadcast %170 : vector<1x40xf32> to vector<8x40xf32>
    %291 = arith.addf %289, %290 : vector<8x40xf32>
    %292 = vector.extract_strided_slice %291 {offsets = [0, 0], sizes = [8, 32], strides = [1, 1]} : vector<8x40xf32> to vector<8x32xf32>
    %293 = arith.subf %148, %292 : vector<8x32xf32>
    %294 = vector.extract_strided_slice %291 {offsets = [0, 32], sizes = [8, 8], strides = [1, 1]} : vector<8x40xf32> to vector<8x8xf32>
    %295 = arith.addf %150, %294 : vector<8x8xf32>
    %c2 = arith.constant 2 : index
    %c0_140 = arith.constant 0 : index
    %c0_141 = arith.constant 0 : index
    %296 = vector.load %arg3[%c2, %c0_140, %c0_141] : memref<3x32x424xf32, #tpu.memory_space<vmem>>, vector<1x32x256xf32>
    %297 = vector.shape_cast %296 : vector<1x32x256xf32> to vector<32x256xf32>
    %c2_142 = arith.constant 2 : index
    %c0_143 = arith.constant 0 : index
    %c256_144 = arith.constant 256 : index
    %298 = vector.load %arg3[%c2_142, %c0_143, %c256_144] : memref<3x32x424xf32, #tpu.memory_space<vmem>>, vector<1x32x128xf32>
    %299 = vector.shape_cast %298 : vector<1x32x128xf32> to vector<32x128xf32>
    %c2_145 = arith.constant 2 : index
    %c0_146 = arith.constant 0 : index
    %c384_147 = arith.constant 384 : index
    %300 = vector.load %arg3[%c2_145, %c0_146, %c384_147] : memref<3x32x424xf32, #tpu.memory_space<vmem>>, vector<1x32x40xf32>
    %301 = vector.shape_cast %300 : vector<1x32x40xf32> to vector<32x40xf32>
    %c2_148 = arith.constant 2 : index
    %c0_149 = arith.constant 0 : index
    %c0_150 = arith.constant 0 : index
    %302 = vector.load %arg4[%c2_148, %c0_149, %c0_150] : memref<3x384x32xf32, #tpu.memory_space<vmem>>, vector<1x256x32xf32>
    %303 = vector.shape_cast %302 : vector<1x256x32xf32> to vector<256x32xf32>
    %c2_151 = arith.constant 2 : index
    %c256_152 = arith.constant 256 : index
    %c0_153 = arith.constant 0 : index
    %304 = vector.load %arg4[%c2_151, %c256_152, %c0_153] : memref<3x384x32xf32, #tpu.memory_space<vmem>>, vector<1x128x32xf32>
    %305 = vector.shape_cast %304 : vector<1x128x32xf32> to vector<128x32xf32>
    %c2_154 = arith.constant 2 : index
    %c0_155 = arith.constant 0 : index
    %c0_156 = arith.constant 0 : index
    %306 = vector.load %arg5[%c2_154, %c0_155, %c0_156] : memref<3x1x768xf32, #tpu.memory_space<vmem>>, vector<1x1x256xf32>
    %307 = vector.shape_cast %306 : vector<1x1x256xf32> to vector<1x256xf32>
    %c2_157 = arith.constant 2 : index
    %c0_158 = arith.constant 0 : index
    %c256_159 = arith.constant 256 : index
    %308 = vector.load %arg5[%c2_157, %c0_158, %c256_159] : memref<3x1x768xf32, #tpu.memory_space<vmem>>, vector<1x1x128xf32>
    %309 = vector.shape_cast %308 : vector<1x1x128xf32> to vector<1x128xf32>
    %c2_160 = arith.constant 2 : index
    %c0_161 = arith.constant 0 : index
    %c384_162 = arith.constant 384 : index
    %310 = vector.load %arg5[%c2_160, %c0_161, %c384_162] : memref<3x1x768xf32, #tpu.memory_space<vmem>>, vector<1x1x32xf32>
    %311 = vector.shape_cast %310 : vector<1x1x32xf32> to vector<1x32xf32>
    %c2_163 = arith.constant 2 : index
    %c0_164 = arith.constant 0 : index
    %c512_165 = arith.constant 512 : index
    %312 = vector.load %arg5[%c2_163, %c0_164, %c512_165] : memref<3x1x768xf32, #tpu.memory_space<vmem>>, vector<1x1x32xf32>
    %313 = vector.shape_cast %312 : vector<1x1x32xf32> to vector<1x32xf32>
    %c2_166 = arith.constant 2 : index
    %c0_167 = arith.constant 0 : index
    %c640_168 = arith.constant 640 : index
    %314 = vector.load %arg5[%c2_166, %c0_167, %c640_168] : memref<3x1x768xf32, #tpu.memory_space<vmem>>, vector<1x1x40xf32>
    %315 = vector.shape_cast %314 : vector<1x1x40xf32> to vector<1x40xf32>
    %316 = arith.mulf %293, %293 : vector<8x32xf32>
    %317 = tpu.concatenate %293, %316 in 0 : vector<8x32xf32>, vector<8x32xf32> -> vector<16x32xf32>
    %cst_169 = arith.constant dense<0.000000e+00> : vector<16x32xf32>
    %318 = tpu.matmul %317, %1, %cst_169 {dimension_numbers = #tpu.dot_dimension_numbers<[1], [0], [0], [1], [0, 0, 1, 1], [], []>} : vector<16x32xf32>, vector<32x32xf32>, vector<16x32xf32> -> vector<16x32xf32>
    %319 = vector.extract_strided_slice %318 {offsets = [0, 0], sizes = [8, 32], strides = [1, 1]} : vector<16x32xf32> to vector<8x32xf32>
    %320 = vector.extract_strided_slice %318 {offsets = [8, 0], sizes = [8, 32], strides = [1, 1]} : vector<16x32xf32> to vector<8x32xf32>
    %321 = arith.subf %293, %319 : vector<8x32xf32>
    %322 = arith.mulf %319, %319 : vector<8x32xf32>
    %323 = arith.subf %320, %322 : vector<8x32xf32>
    %cst_170 = arith.constant 9.99999974E-6 : f32
    %324 = vector.broadcast %cst_170 : f32 to vector<8x32xf32>
    %325 = arith.addf %323, %324 : vector<8x32xf32>
    %326 = math.rsqrt %325 : vector<8x32xf32>
    %327 = arith.mulf %321, %326 : vector<8x32xf32>
    %cst_171 = arith.constant dense<0.000000e+00> : vector<8x256xf32>
    %328 = tpu.matmul %327, %297, %cst_171 {dimension_numbers = #tpu.dot_dimension_numbers<[1], [0], [0], [1], [0, 0, 1, 1], [], []>} : vector<8x32xf32>, vector<32x256xf32>, vector<8x256xf32> -> vector<8x256xf32>
    %329 = vector.broadcast %307 : vector<1x256xf32> to vector<8x256xf32>
    %330 = arith.addf %328, %329 : vector<8x256xf32>
    %cst_172 = arith.constant 0.707106769 : f32
    %331 = vector.broadcast %cst_172 : f32 to vector<8x256xf32>
    %332 = arith.mulf %330, %331 : vector<8x256xf32>
    %333 = math.absf %332 : vector<8x256xf32>
    %cst_173 = arith.constant 0.327591091 : f32
    %334 = vector.broadcast %cst_173 : f32 to vector<8x256xf32>
    %335 = arith.mulf %334, %333 : vector<8x256xf32>
    %cst_174 = arith.constant 1.000000e+00 : f32
    %336 = vector.broadcast %cst_174 : f32 to vector<8x256xf32>
    %337 = arith.addf %336, %335 : vector<8x256xf32>
    %cst_175 = arith.constant 1.000000e+00 : f32
    %338 = vector.broadcast %cst_175 : f32 to vector<8x256xf32>
    %339 = arith.divf %338, %337 : vector<8x256xf32>
    %cst_176 = arith.constant 1.06140542 : f32
    %340 = vector.broadcast %cst_176 : f32 to vector<8x256xf32>
    %341 = arith.mulf %339, %340 : vector<8x256xf32>
    %cst_177 = arith.constant -1.45315206 : f32
    %342 = vector.broadcast %cst_177 : f32 to vector<8x256xf32>
    %343 = arith.addf %342, %341 : vector<8x256xf32>
    %344 = arith.mulf %339, %343 : vector<8x256xf32>
    %cst_178 = arith.constant 1.42141378 : f32
    %345 = vector.broadcast %cst_178 : f32 to vector<8x256xf32>
    %346 = arith.addf %345, %344 : vector<8x256xf32>
    %347 = arith.mulf %339, %346 : vector<8x256xf32>
    %cst_179 = arith.constant -0.284496725 : f32
    %348 = vector.broadcast %cst_179 : f32 to vector<8x256xf32>
    %349 = arith.addf %348, %347 : vector<8x256xf32>
    %350 = arith.mulf %339, %349 : vector<8x256xf32>
    %cst_180 = arith.constant 0.254829586 : f32
    %351 = vector.broadcast %cst_180 : f32 to vector<8x256xf32>
    %352 = arith.addf %351, %350 : vector<8x256xf32>
    %353 = arith.mulf %339, %352 : vector<8x256xf32>
    %cst_181 = arith.constant 0.000000e+00 : f32
    %354 = vector.broadcast %cst_181 : f32 to vector<8x256xf32>
    %355 = arith.subf %354, %333 : vector<8x256xf32>
    %356 = arith.mulf %355, %333 : vector<8x256xf32>
    %357 = math.exp %356 : vector<8x256xf32>
    %358 = arith.mulf %353, %357 : vector<8x256xf32>
    %cst_182 = arith.constant 1.000000e+00 : f32
    %359 = vector.broadcast %cst_182 : f32 to vector<8x256xf32>
    %360 = arith.subf %359, %358 : vector<8x256xf32>
    %cst_183 = arith.constant 0.000000e+00 : f32
    %361 = vector.broadcast %cst_183 : f32 to vector<8x256xf32>
    %362 = arith.cmpf oge, %332, %361 : vector<8x256xf32>
    %cst_184 = arith.constant 0.000000e+00 : f32
    %363 = vector.broadcast %cst_184 : f32 to vector<8x256xf32>
    %364 = arith.subf %363, %360 : vector<8x256xf32>
    %365 = arith.select %362, %360, %364 : vector<8x256xi1>, vector<8x256xf32>
    %cst_185 = arith.constant 5.000000e-01 : f32
    %366 = vector.broadcast %cst_185 : f32 to vector<8x256xf32>
    %367 = arith.mulf %366, %330 : vector<8x256xf32>
    %cst_186 = arith.constant 1.000000e+00 : f32
    %368 = vector.broadcast %cst_186 : f32 to vector<8x256xf32>
    %369 = arith.addf %368, %365 : vector<8x256xf32>
    %370 = arith.mulf %367, %369 : vector<8x256xf32>
    %cst_187 = arith.constant dense<0.000000e+00> : vector<8x32xf32>
    %371 = tpu.matmul %370, %303, %cst_187 {dimension_numbers = #tpu.dot_dimension_numbers<[1], [0], [0], [1], [0, 0, 1, 1], [], []>} : vector<8x256xf32>, vector<256x32xf32>, vector<8x32xf32> -> vector<8x32xf32>
    %372 = arith.addf %293, %371 : vector<8x32xf32>
    %373 = vector.broadcast %311 : vector<1x32xf32> to vector<8x32xf32>
    %374 = arith.addf %372, %373 : vector<8x32xf32>
    %375 = arith.mulf %374, %374 : vector<8x32xf32>
    %376 = tpu.concatenate %374, %375 in 0 : vector<8x32xf32>, vector<8x32xf32> -> vector<16x32xf32>
    %cst_188 = arith.constant dense<0.000000e+00> : vector<16x32xf32>
    %377 = tpu.matmul %376, %3, %cst_188 {dimension_numbers = #tpu.dot_dimension_numbers<[1], [0], [0], [1], [0, 0, 1, 1], [], []>} : vector<16x32xf32>, vector<32x32xf32>, vector<16x32xf32> -> vector<16x32xf32>
    %378 = vector.extract_strided_slice %377 {offsets = [0, 0], sizes = [8, 32], strides = [1, 1]} : vector<16x32xf32> to vector<8x32xf32>
    %379 = vector.extract_strided_slice %377 {offsets = [8, 0], sizes = [8, 32], strides = [1, 1]} : vector<16x32xf32> to vector<8x32xf32>
    %380 = arith.subf %374, %378 : vector<8x32xf32>
    %381 = arith.mulf %378, %378 : vector<8x32xf32>
    %382 = arith.subf %379, %381 : vector<8x32xf32>
    %cst_189 = arith.constant 9.99999974E-6 : f32
    %383 = vector.broadcast %cst_189 : f32 to vector<8x32xf32>
    %384 = arith.addf %382, %383 : vector<8x32xf32>
    %385 = math.rsqrt %384 : vector<8x32xf32>
    %386 = arith.mulf %380, %385 : vector<8x32xf32>
    %cst_190 = arith.constant dense<0.000000e+00> : vector<8x128xf32>
    %387 = tpu.matmul %386, %299, %cst_190 {dimension_numbers = #tpu.dot_dimension_numbers<[1], [0], [0], [1], [0, 0, 1, 1], [], []>} : vector<8x32xf32>, vector<32x128xf32>, vector<8x128xf32> -> vector<8x128xf32>
    %388 = vector.broadcast %309 : vector<1x128xf32> to vector<8x128xf32>
    %389 = arith.addf %387, %388 : vector<8x128xf32>
    %cst_191 = arith.constant 0.707106769 : f32
    %390 = vector.broadcast %cst_191 : f32 to vector<8x128xf32>
    %391 = arith.mulf %389, %390 : vector<8x128xf32>
    %392 = math.absf %391 : vector<8x128xf32>
    %cst_192 = arith.constant 0.327591091 : f32
    %393 = vector.broadcast %cst_192 : f32 to vector<8x128xf32>
    %394 = arith.mulf %393, %392 : vector<8x128xf32>
    %cst_193 = arith.constant 1.000000e+00 : f32
    %395 = vector.broadcast %cst_193 : f32 to vector<8x128xf32>
    %396 = arith.addf %395, %394 : vector<8x128xf32>
    %cst_194 = arith.constant 1.000000e+00 : f32
    %397 = vector.broadcast %cst_194 : f32 to vector<8x128xf32>
    %398 = arith.divf %397, %396 : vector<8x128xf32>
    %cst_195 = arith.constant 1.06140542 : f32
    %399 = vector.broadcast %cst_195 : f32 to vector<8x128xf32>
    %400 = arith.mulf %398, %399 : vector<8x128xf32>
    %cst_196 = arith.constant -1.45315206 : f32
    %401 = vector.broadcast %cst_196 : f32 to vector<8x128xf32>
    %402 = arith.addf %401, %400 : vector<8x128xf32>
    %403 = arith.mulf %398, %402 : vector<8x128xf32>
    %cst_197 = arith.constant 1.42141378 : f32
    %404 = vector.broadcast %cst_197 : f32 to vector<8x128xf32>
    %405 = arith.addf %404, %403 : vector<8x128xf32>
    %406 = arith.mulf %398, %405 : vector<8x128xf32>
    %cst_198 = arith.constant -0.284496725 : f32
    %407 = vector.broadcast %cst_198 : f32 to vector<8x128xf32>
    %408 = arith.addf %407, %406 : vector<8x128xf32>
    %409 = arith.mulf %398, %408 : vector<8x128xf32>
    %cst_199 = arith.constant 0.254829586 : f32
    %410 = vector.broadcast %cst_199 : f32 to vector<8x128xf32>
    %411 = arith.addf %410, %409 : vector<8x128xf32>
    %412 = arith.mulf %398, %411 : vector<8x128xf32>
    %cst_200 = arith.constant 0.000000e+00 : f32
    %413 = vector.broadcast %cst_200 : f32 to vector<8x128xf32>
    %414 = arith.subf %413, %392 : vector<8x128xf32>
    %415 = arith.mulf %414, %392 : vector<8x128xf32>
    %416 = math.exp %415 : vector<8x128xf32>
    %417 = arith.mulf %412, %416 : vector<8x128xf32>
    %cst_201 = arith.constant 1.000000e+00 : f32
    %418 = vector.broadcast %cst_201 : f32 to vector<8x128xf32>
    %419 = arith.subf %418, %417 : vector<8x128xf32>
    %cst_202 = arith.constant 0.000000e+00 : f32
    %420 = vector.broadcast %cst_202 : f32 to vector<8x128xf32>
    %421 = arith.cmpf oge, %391, %420 : vector<8x128xf32>
    %cst_203 = arith.constant 0.000000e+00 : f32
    %422 = vector.broadcast %cst_203 : f32 to vector<8x128xf32>
    %423 = arith.subf %422, %419 : vector<8x128xf32>
    %424 = arith.select %421, %419, %423 : vector<8x128xi1>, vector<8x128xf32>
    %cst_204 = arith.constant 5.000000e-01 : f32
    %425 = vector.broadcast %cst_204 : f32 to vector<8x128xf32>
    %426 = arith.mulf %425, %389 : vector<8x128xf32>
    %cst_205 = arith.constant 1.000000e+00 : f32
    %427 = vector.broadcast %cst_205 : f32 to vector<8x128xf32>
    %428 = arith.addf %427, %424 : vector<8x128xf32>
    %429 = arith.mulf %426, %428 : vector<8x128xf32>
    %cst_206 = arith.constant dense<0.000000e+00> : vector<8x32xf32>
    %430 = tpu.matmul %429, %305, %cst_206 {dimension_numbers = #tpu.dot_dimension_numbers<[1], [0], [0], [1], [0, 0, 1, 1], [], []>} : vector<8x128xf32>, vector<128x32xf32>, vector<8x32xf32> -> vector<8x32xf32>
    %431 = arith.addf %374, %430 : vector<8x32xf32>
    %432 = vector.broadcast %313 : vector<1x32xf32> to vector<8x32xf32>
    %433 = arith.addf %431, %432 : vector<8x32xf32>
    %cst_207 = arith.constant dense<0.000000e+00> : vector<8x40xf32>
    %434 = tpu.matmul %433, %301, %cst_207 {dimension_numbers = #tpu.dot_dimension_numbers<[1], [0], [0], [1], [0, 0, 1, 1], [], []>} : vector<8x32xf32>, vector<32x40xf32>, vector<8x40xf32> -> vector<8x40xf32>
    %435 = vector.broadcast %315 : vector<1x40xf32> to vector<8x40xf32>
    %436 = arith.addf %434, %435 : vector<8x40xf32>
    %437 = vector.extract_strided_slice %436 {offsets = [0, 0], sizes = [8, 32], strides = [1, 1]} : vector<8x40xf32> to vector<8x32xf32>
    %438 = arith.subf %293, %437 : vector<8x32xf32>
    %439 = vector.extract_strided_slice %436 {offsets = [0, 32], sizes = [8, 8], strides = [1, 1]} : vector<8x40xf32> to vector<8x8xf32>
    %440 = arith.addf %295, %439 : vector<8x8xf32>
    %c0_208 = arith.constant 0 : index
    %c0_209 = arith.constant 0 : index
    %441 = vector.load %arg6[%c0_208, %c0_209] : memref<8x32xf32, #tpu.memory_space<vmem>>, vector<8x32xf32>
    tpu.vector_store %arg6[%c0_208, %c0_209], %438 {strides = array<i32>} : memref<8x32xf32, #tpu.memory_space<vmem>>, vector<8x32xf32>,
    %c0_210 = arith.constant 0 : index
    %c0_211 = arith.constant 0 : index
    %442 = vector.load %arg7[%c0_210, %c0_211] : memref<8x8xf32, #tpu.memory_space<vmem>>, vector<8x8xf32>
    tpu.vector_store %arg7[%c0_210, %c0_211], %440 {strides = array<i32>} : memref<8x8xf32, #tpu.memory_space<vmem>>, vector<8x8xf32>,
    return
  }
  func.func @transform_0(%arg0: i32) -> (i32, i32) {
    %c0_i32 = arith.constant 0 : i32
    %c0_i32_0 = arith.constant 0 : i32
    %c0_i32_1 = arith.constant 0 : i32
    return %c0_i32, %c0_i32_0 : i32, i32
  }
  func.func @transform_1(%arg0: i32) -> (i32, i32, i32) {
    %c0_i32 = arith.constant 0 : i32
    %c0_i32_0 = arith.constant 0 : i32
    %c0_i32_1 = arith.constant 0 : i32
    %c0_i32_2 = arith.constant 0 : i32
    return %c0_i32, %c0_i32_0, %c0_i32_1 : i32, i32, i32
  }
  func.func @transform_2(%arg0: i32) -> (i32, i32, i32) {
    %c0_i32 = arith.constant 0 : i32
    %c0_i32_0 = arith.constant 0 : i32
    %c0_i32_1 = arith.constant 0 : i32
    %c0_i32_2 = arith.constant 0 : i32
    return %c0_i32, %c0_i32_0, %c0_i32_1 : i32, i32, i32
  }
  func.func @transform_3(%arg0: i32) -> (i32, i32, i32) {
    %c0_i32 = arith.constant 0 : i32
    %c0_i32_0 = arith.constant 0 : i32
    %c0_i32_1 = arith.constant 0 : i32
    %c0_i32_2 = arith.constant 0 : i32
    return %c0_i32, %c0_i32_0, %c0_i32_1 : i32, i32, i32
  }
  func.func @transform_4(%arg0: i32) -> (i32, i32, i32) {
    %c0_i32 = arith.constant 0 : i32
    %c0_i32_0 = arith.constant 0 : i32
    %c0_i32_1 = arith.constant 0 : i32
    %c0_i32_2 = arith.constant 0 : i32
    return %c0_i32, %c0_i32_0, %c0_i32_1 : i32, i32, i32
  }
  func.func @transform_5(%arg0: i32) -> (i32, i32) {
    %c0_i32 = arith.constant 0 : i32
    %c0_i32_0 = arith.constant 0 : i32
    %c0_i32_1 = arith.constant 0 : i32
    return %c0_i32, %c0_i32_0 : i32, i32
  }
  func.func @transform_6(%arg0: i32) -> (i32, i32) {
    %c0_i32 = arith.constant 0 : i32
    %c0_i32_0 = arith.constant 0 : i32
    %c0_i32_1 = arith.constant 0 : i32
    return %c0_i32, %c0_i32_0 : i32, i32
  }
}

</mosaic_0001>

<bundles_post_ra>
// kernel: tpu_custom_call.1
= control target key start
LH: loop header
LB: loop body
LE: loop exit
PB: predicated region body
PF: predicated region fallthrough
CT: control target
= control target key end

     0   :  { %12 = vsyncpa [#allocation3], 0  ;;  %vm104_vm0 = vcmask 261120   ;;  %s2641_s0 = inlined_call_operand.vmem [shape: f32[8,32], index: 0, kind: input, shape index: {}]   ;;  %s2642_s1 = inlined_call_operand.vmem [shape: f32[2,32,32], index: 1, kind: input, shape index: {}]   ;;  %s2643_s2 = inlined_call_operand.vmem [shape: f32[3,32,424], index: 2, kind: input, shape index: {}]   ;;  %s2644_s3 = inlined_call_operand.vmem [shape: f32[3,384,32], index: 3, kind: input, shape index: {}]   ;;  %s2645_s4 = inlined_call_operand.vmem [shape: f32[3,1,768], index: 4, kind: input, shape index: {}]   ;;  %s2646_s5 = inlined_call_operand.hbm [shape: f32[8,32], index: 5, kind: output, shape index: {0}]   ;;  %s2647_s6 = inlined_call_operand.hbm [shape: f32[8,8], index: 6, kind: output, shape index: {1}]  }
   0x1   :  { %v1760_v0 = vld [vmem:[%s2642_s1 + $0x18] sm:$0xff]  ;;  %v1765_v1 = vld [vmem:[%s2642_s1 + $0x10] sm:$0xff]  ;;  %v1771_v2 = vld [vmem:[%s2642_s1 + $0x8] sm:$0xff] }
   0x2   :  { %123 = vmatpush.msra.mxu0 %v1760_v0  ;;  %v1776_v3 = vld [vmem:[%s2642_s1] sm:$0xff] }
   0x3   :  { %v1782_v4 = vld [vmem:[%s2641_s0] sm:$0xff] }
   0x4   :  { %124 = vmatpush.msra.mxu0 %v1765_v1 }
   0x6   :  { %125 = vmatpush.msra.mxu0 %v1771_v2 }
   0x7   :  { %13 = vsyncpa [#allocation5], 0  ;;  %v103_v5 = vmul.f32 %v1782_v4, %v1782_v4  ;;  %v40_v6 = vld [vmem:[%s2643_s2 + $0x60] sm:$0xff]  ;;  %v41_v7 = vld [vmem:[%s2643_s2 + $0x68] sm:$0xff]  ;;  %s1719_s8 = smov [#allocation2]   ;;  %s1408_s10 = sshll.u32 %s2646_s5, 4  ;;  %s1409_s10 = int_to_ptr.hbm [resolvable:$true] %s1408_s10 }
   0x8   :  { %126 = vmatpush.msra.mxu0 %v1776_v3  ;;  %169 = vmatpush.msra.mxu1 %v40_v6  ;;  %v38_v8 = vld [vmem:[%s2643_s2 + $0x40] sm:$0xff]  ;;  %v39_v9 = vld [vmem:[%s2643_s2 + $0x48] sm:$0xff]  ;;  %v65_v29 = vld [vmem:[%s2644_s3 + $0x78] sm:$0xff]  ;;  %s1406_s9 = sshll.u32 %s1719_s8, 4  ;;  %s1720_s11 = smov 96   ;;  %s1407_s9 = int_to_ptr.vmem [resolvable:$true] %s1406_s9 }
   0x9   :  { %1437 = vmatmul.msk.f32.vlgmr.msra.gmra.mxu0 %vm104_vm0, %v1782_v4  ;;  %189 = vmatpush.msra.mxu2 %v41_v7  ;;  %v36_v10 = vld [vmem:[%s2643_s2 + $0x20] sm:$0xff]  ;;  %v37_v11 = vld [vmem:[%s2643_s2 + $0x28] sm:$0xff]  ;;  %v64_v30 = vld [vmem:[%s2644_s3 + $0x70] sm:$0xff]  ;;  %s1419_s5 = sshll.u32 %s2647_s6, 4  ;;  %s1420_s5 = int_to_ptr.hbm [resolvable:$true] %s1419_s5 }
   0xa   :  { %170 = vmatpush.msra.mxu1 %v38_v8  ;;  %v34_v12 = vld [vmem:[%s2643_s2] sm:$0xff]  ;;  %v35_v13 = vld [vmem:[%s2643_s2 + $0x8] sm:$0xff]  ;;  %277 = vmatpush.msra.mxu3 %v65_v29  ;;  %v81_v33 = vld [vmem:[%s2644_s3 + $0xf8] sm:$0xff] }
   0xb   :  { %190 = vmatpush.msra.mxu2 %v39_v9  ;;  %v98_v28 = vld [vmem:[%s2645_s4] sm:$0x3]  ;;  %v63_v31 = vld [vmem:[%s2644_s3 + $0x68] sm:$0xff]  ;;  %v80_v34 = vld [vmem:[%s2644_s3 + $0xf0] sm:$0xff]  ;;  %297 = vmatpush.msrb.mxu0 %v81_v33 }
   0xc   :  { %171 = vmatpush.msra.mxu1 %v36_v10  ;;  %v150_v32 = vperm.slane %v98_v28, 0  ;;  %278 = vmatpush.msra.mxu3 %v64_v30  ;;  %v62_v35 = vld [vmem:[%s2644_s3 + $0x60] sm:$0xff]  ;;  %v79_v36 = vld [vmem:[%s2644_s3 + $0xe8] sm:$0xff]  ;;  %v61_v38 = vld [vmem:[%s2644_s3 + $0x58] sm:$0xff]  ;;  %v151_v43 = vperm.slane %v98_v28, 1 }
   0xd   :  { %191 = vmatpush.msra.mxu2 %v37_v11  ;;  %298 = vmatpush.msrb.mxu0 %v80_v34  ;;  %v78_v40 = vld [vmem:[%s2644_s3 + $0xe0] sm:$0xff]  ;;  %v60_v41 = vld [vmem:[%s2644_s3 + $0x50] sm:$0xff]  ;;  %v77_v44 = vld [vmem:[%s2644_s3 + $0xd8] sm:$0xff] }
   0xe   :  { %172 = vmatpush.msra.mxu1 %v34_v12  ;;  %279 = vmatpush.msra.mxu3 %v63_v31  ;;  %v59_v45 = vld [vmem:[%s2644_s3 + $0x48] sm:$0xff]  ;;  %v76_v47 = vld [vmem:[%s2644_s3 + $0xd0] sm:$0xff]  ;;  %v58_v49 = vld [vmem:[%s2644_s3 + $0x40] sm:$0xff] }
   0xf   :  { %192 = vmatpush.msra.mxu2 %v35_v13  ;;  %299 = vmatpush.msrb.mxu0 %v79_v36  ;;  %v75_v52 = vld [vmem:[%s2644_s3 + $0xc8] sm:$0xff]  ;;  %v57_v53 = vld [vmem:[%s2644_s3 + $0x38] sm:$0xff]  ;;  %v74_v56 = vld [vmem:[%s2644_s3 + $0xc0] sm:$0xff] }
  0x10   :  { %280 = vmatpush.msra.mxu3 %v62_v35  ;;  %v56_v57 = vld [vmem:[%s2644_s3 + $0x30] sm:$0xff]  ;;  %v73_v59 = vld [vmem:[%s2644_s3 + $0xb8] sm:$0xff]  ;;  %v55_v60 = vld [vmem:[%s2644_s3 + $0x28] sm:$0xff] }
  0x11   :  { %1438 = vmatmul.msk.f32.gmra.mxu0 %vm104_vm0, %v103_v5  ;;  %v72_v62 = vld [vmem:[%s2644_s3 + $0xb0] sm:$0xff]  ;;  %v54_v63 = vld [vmem:[%s2644_s3 + $0x20] sm:$0xff]  ;;  %v71_v6 = vld [vmem:[%s2644_s3 + $0xa8] sm:$0xff] }
  0x12   :  { %281 = vmatpush.msra.mxu3 %v61_v38  ;;  %300 = vmatpush.msrb.mxu0 %v78_v40  ;;  %v53_v7 = vld [vmem:[%s2644_s3 + $0x18] sm:$0xff]  ;;  %v70_v9 = vld [vmem:[%s2644_s3 + $0xa0] sm:$0xff]  ;;  %v52_v11 = vld [vmem:[%s2644_s3 + $0x10] sm:$0xff] }
  0x13   :  { %v69_v12 = vld [vmem:[%s2644_s3 + $0x98] sm:$0xff]  ;;  %v66_v30 = vld [vmem:[%s2644_s3 + $0x80] sm:$0xff] }
  0x14   :  { %282 = vmatpush.msra.mxu3 %v60_v41  ;;  %301 = vmatpush.msrb.mxu0 %v77_v44  ;;  %v1940_v38 = vld [vmem:[%s2642_s1 + $0x38] sm:$0xff] }
  0x15   :  { %341 = vmatpush.msrb.mxu1 %v1940_v38 }
  0x16   :  { %283 = vmatpush.msra.mxu3 %v59_v45  ;;  %302 = vmatpush.msrb.mxu0 %v76_v47 }
  0x18   :  { %284 = vmatpush.msra.mxu3 %v58_v49  ;;  %303 = vmatpush.msrb.mxu0 %v75_v52 }
  0x1a   :  { %285 = vmatpush.msra.mxu3 %v57_v53  ;;  %304 = vmatpush.msrb.mxu0 %v74_v56 }
  0x1c   :  { %286 = vmatpush.msra.mxu3 %v56_v57  ;;  %305 = vmatpush.msrb.mxu0 %v73_v59 }
  0x1e   :  { %287 = vmatpush.msra.mxu3 %v55_v60  ;;  %306 = vmatpush.msrb.mxu0 %v72_v62 }
  0x20   :  { %288 = vmatpush.msra.mxu3 %v54_v63  ;;  %307 = vmatpush.msrb.mxu0 %v71_v6 }
  0x22   :  { %289 = vmatpush.msra.mxu3 %v53_v7  ;;  %308 = vmatpush.msrb.mxu0 %v70_v9 }
  0x24   :  { %290 = vmatpush.msra.mxu3 %v52_v11  ;;  %309 = vmatpush.msrb.mxu0 %v69_v12 }
  0x86   :  { %v128_v14 = vpop.f32.mrf.mxu0 }
  0x87   :  { %v135_v15 = vmul.f32 %v128_v14, %v128_v14  ;;  %v134_v25 = vsub.f32 %v1782_v4, %v128_v14  ;;  %v51_v14 = vld [vmem:[%s2644_s3 + $0x8] sm:$0xff] }
  0x88   :  { %291 = vmatpush.msra.mxu3 %v51_v14 }
  0x8e   :  { %v131_v16 = vpop.f32.mrf.mxu0 }
  0x8f   :  { %v136_v17 = vsub.f32 %v131_v16, %v135_v15 }
  0x91   :  { %v137_v18 = vadd.f32 1e-05, %v136_v17  ;;  %v50_v17 = vld [vmem:[%s2644_s3] sm:$0xff] }
  0x92   :  { %292 = vmatpush.msra.mxu3 %v50_v17 }
  0x93   :  { %1614 = vrsqrt.f32 %v137_v18  ;;  %vm144_vm2 = vweird.f32 %v137_v18 }
  0x99   :  { %v1615_v19 = vpop.eup %1614 }
  0x9a   :  { %v139_v20 = vmul.f32 %v1615_v19, %v137_v18  ;;  %vm145_vm1 = vweird.f32 %v1615_v19 }
  0x9b   :  { %vm146_vm3 = vmor %vm144_vm2, %vm145_vm1 }
  0x9c   :  { %v140_v21 = vmul.f32 %v1615_v19, %v139_v20 }
  0x9e   :  { %v141_v22 = vmul.f32 0.5, %v140_v21 }
  0xa0   :  { %v142_v23 = vsub.f32 1.5, %v141_v22 }
  0xa2   :  { %v143_v24 = vmul.f32 %v1615_v19, %v142_v23  ;;  %v68_v23 = vld [vmem:[%s2644_s3 + $0x90] sm:$0xff] }
  0xa3   :  { %310 = vmatpush.msrb.mxu0 %v68_v23 }
  0xa4   :  { %v147_v26 = vsel %vm146_vm3, %v1615_v19, %v143_v24  ;;  %v67_v24 = vld [vmem:[%s2644_s3 + $0x88] sm:$0xff] }
  0xa5   :  { %v148_v27 = vmul.f32 %v147_v26, %v134_v25  ;;  %311 = vmatpush.msrb.mxu0 %v67_v24  ;;  %v1602_v24 = vld [vmem:[%s2645_s4 + $0x3] ss:$0 sm:$0xff] }
  0xa7   :  { %1439 = vmatmul.msk.f32.vlgmr.msra.gmra.mxu1 %vm104_vm0, %v148_v27  ;;  %1440 = vmatmul.msk.f32.vlgmr.msra.gmra.mxu2 %vm104_vm0, %v148_v27 }
  0xa8   :  { %312 = vmatpush.msrb.mxu0 %v66_v30  ;;  %v43_v30 = vld [vmem:[%s2643_s2 + $0x30] sm:$0xff] }
 0x124   :  { %v174_v37 = vpop.f32.mrf.mxu1 }
 0x125   :  { %v1845_v39 = vadd.f32 %v174_v37, %v150_v32 }
 0x127   :  { %v1854_v42 = vmul.f32 0.70710677, %v1845_v39 }
 0x129   :  { %v1863_v46 = vand.u32 2147483647, %v1854_v42  ;;  %vm265_vm12 = vcmp.ge.f32.partialorder %v1854_v42, 0.0  ;;  %v1952_v42 = vld [vmem:[%s2642_s1 + $0x30] sm:$0xff] }
 0x12a   :  { %v194_v48 = vpop.f32.mrf.mxu2  ;;  %342 = vmatpush.msrb.mxu1 %v1952_v42 }
 0x12b   :  { %v201_v50 = vmul.f32 0.3275911, %v1863_v46  ;;  %v1872_v51 = vadd.f32 %v194_v48, %v151_v43  ;;  %v253_v27 = vsub.f32 0.0, %v1863_v46 }
 0x12d   :  { %v203_v54 = vadd.f32 1.0, %v201_v50  ;;  %v1881_v55 = vmul.f32 0.70710677, %v1872_v51  ;;  %v255_v36 = vmul.f32 %v253_v27, %v1863_v46 }
 0x12f   :  { %1616 = vrcp.f32 %v203_v54  ;;  %v1890_v58 = vand.u32 2147483647, %v1881_v55  ;;  %v216_v15 = vand.u32 2147483648, %v203_v54  ;;  %v214_v18 = vand.u32 2147483647, %v203_v54 }
 0x130   :  { %vm210_vm5 = vweird.f32 %v203_v54  ;;  %v257_v48 = vmul.f32 1.442695, %v255_v36  ;;  %vm266_vm13 = vcmp.ge.f32.partialorder %v1881_v55, 0.0 }
 0x131   :  { %v202_v61 = vmul.f32 0.3275911, %v1890_v58  ;;  %v217_v22 = vor.u32 1.1754944e-38, %v216_v15  ;;  %vm215_vm7 = vcmp.eq.f32.partialorder %v214_v18, 8.507059e+37  ;;  %v254_v43 = vsub.f32 0.0, %v1890_v58 }
 0x133   :  { %v204_v5 = vadd.f32 1.0, %v202_v61  ;;  %v256_v50 = vmul.f32 %v254_v43, %v1890_v58 }
 0x135   :  { %v1617_v8 = vpop.eup %1616  ;;  %1618 = vrcp.f32 %v204_v5  ;;  %v231_v28 = vand.u32 2147483648, %v204_v5  ;;  %v229_v32 = vand.u32 2147483647, %v204_v5  ;;  %vm225_vm9 = vweird.f32 %v204_v5 }
 0x136   :  { %v206_v10 = vmul.f32 %v1617_v8, %v203_v54  ;;  %vm211_vm4 = vweird.f32 %v1617_v8  ;;  %1620 = vpow2.f32 %v257_v48  ;;  %v259_v57 = vmul.f32 1.442695, %v256_v50  ;;  %v96_v50 = vld [vmem:[%s2644_s3 + $0x170] sm:$0xff] }
 0x137   :  { %vm212_vm6 = vmor %vm210_vm5, %vm211_vm4  ;;  %v232_v37 = vor.u32 1.1754944e-38, %v231_v28  ;;  %vm230_vm11 = vcmp.eq.f32.partialorder %v229_v32, 8.507059e+37  ;;  %v45_v28 = vld [vmem:[%s2643_s2 + $0x70] sm:$0xff] }
 0x138   :  { %v207_v13 = vsub.f32 1.0, %v206_v10  ;;  %1622 = vpow2.f32 %v259_v57  ;;  %385 = vmatpush.msra.mxu0 %v45_v28 }
 0x13a   :  { %v208_v16 = vmul.f32 %v1617_v8, %v207_v13  ;;  %v271_v13 = vmul.f32 0.5, %v1845_v39  ;;  %v1958_v39 = vld [vmem:[%s2642_s1 + $0x28] sm:$0xff] }
 0x13b   :  { %v1619_v19 = vpop.eup %1618  ;;  %343 = vmatpush.msrb.mxu1 %v1958_v39 }
 0x13c   :  { %v221_v20 = vmul.f32 %v1619_v19, %v204_v5  ;;  %v209_v21 = vadd.f32 %v1617_v8, %v208_v16  ;;  %vm226_vm8 = vweird.f32 %v1619_v19  ;;  %v1621_v63 = vpop.eup %1620 }
 0x13d   :  { %vm227_vm10 = vmor %vm225_vm9, %vm226_vm8 }
 0x13e   :  { %v222_v25 = vsub.f32 1.0, %v221_v20  ;;  %v213_v26 = vsel %vm212_vm6, %v1617_v8, %v209_v21  ;;  %v1623_v11 = vpop.eup %1622 }
 0x13f   :  { %v218_v29 = vsel %vm215_vm7, %v217_v22, %v213_v26 }
 0x140   :  { %v223_v31 = vmul.f32 %v1619_v19, %v222_v25  ;;  %v235_v33 = vmul.f32 1.0614054, %v218_v29 }
 0x142   :  { %v237_v34 = vadd.f32 -1.4531521, %v235_v33  ;;  %v224_v35 = vadd.f32 %v1619_v19, %v223_v31  ;;  %v42_v31 = vld [vmem:[%s2643_s2 + $0x10] sm:$0xff] }
 0x144   :  { %v239_v40 = vmul.f32 %v237_v34, %v218_v29  ;;  %v228_v41 = vsel %vm227_vm10, %v1619_v19, %v224_v35  ;;  %v272_v19 = vmul.f32 0.5, %v1872_v51  ;;  %v1964_v51 = vld [vmem:[%s2642_s1 + $0x20] sm:$0xff] }
 0x145   :  { %v233_v44 = vsel %vm230_vm11, %v232_v37, %v228_v41  ;;  %344 = vmatpush.msrb.mxu1 %v1964_v51 }
 0x146   :  { %v241_v45 = vadd.f32 1.4214138, %v239_v40  ;;  %v236_v47 = vmul.f32 1.0614054, %v233_v44 }
 0x148   :  { %v243_v49 = vmul.f32 %v241_v45, %v218_v29  ;;  %v238_v46 = vadd.f32 -1.4531521, %v236_v47 }
 0x14a   :  { %v245_v52 = vadd.f32 -0.28449672, %v243_v49  ;;  %v240_v53 = vmul.f32 %v238_v46, %v233_v44  ;;  %v97_v46 = vld [vmem:[%s2644_s3 + $0x178] sm:$0xff] }
 0x14b   :  { %433 = vmatpush.msra.mxu1 %v97_v46 }
 0x14c   :  { %v247_v54 = vmul.f32 %v245_v52, %v218_v29  ;;  %v242_v56 = vadd.f32 1.4214138, %v240_v53  ;;  %v1603_v52 = vld [vmem:[%s2645_s4 + $0x2] ss:$0 sm:$0xff]  ;;  %v95_v53 = vld [vmem:[%s2644_s3 + $0x168] sm:$0xff] }
 0x14d   :  { %434 = vmatpush.msra.mxu1 %v96_v50  ;;  %v47_v50 = vld [vmem:[%s2643_s2 + $0x38] sm:$0xff] }
 0x14e   :  { %v249_v59 = vadd.f32 0.2548296, %v247_v54  ;;  %v244_v60 = vmul.f32 %v242_v56, %v233_v44  ;;  %v94_v56 = vld [vmem:[%s2644_s3 + $0x160] sm:$0xff] }
 0x14f   :  { %435 = vmatpush.msra.mxu1 %v95_v53  ;;  %v1604_v53 = vld [vmem:[%s2645_s4 + $0x4] ss:$0 sm:$0xff] }
 0x150   :  { %v251_v61 = vmul.f32 %v249_v59, %v218_v29  ;;  %v246_v62 = vadd.f32 -0.28449672, %v244_v60  ;;  %v44_v29 = vld [vmem:[%s2643_s2 + $0x50] sm:$0xff]  ;;  %v93_v59 = vld [vmem:[%s2644_s3 + $0x158] sm:$0xff] }
 0x151   :  { %386 = vmatpush.msra.mxu0 %v44_v29  ;;  %436 = vmatpush.msra.mxu1 %v94_v56 }
 0x152   :  { %v261_v5 = vmul.f32 %v1621_v63, %v251_v61  ;;  %v248_v6 = vmul.f32 %v246_v62, %v233_v44  ;;  %v92_v61 = vld [vmem:[%s2644_s3 + $0x150] sm:$0xff]  ;;  %v91_v63 = vld [vmem:[%s2644_s3 + $0x148] sm:$0xff] }
 0x153   :  { %387 = vmatpush.msra.mxu0 %v43_v30  ;;  %437 = vmatpush.msra.mxu1 %v93_v59 }
 0x154   :  { %v263_v7 = vsub.f32 1.0, %v261_v5  ;;  %v250_v8 = vadd.f32 0.2548296, %v248_v6  ;;  %v90_v6 = vld [vmem:[%s2644_s3 + $0x140] sm:$0xff] }
 0x155   :  { %388 = vmatpush.msra.mxu0 %v42_v31  ;;  %438 = vmatpush.msra.mxu1 %v92_v61  ;;  %v1450_v61 = vld [vmem:[%s2643_s2 + $0xc8] sm:$0xff] }
 0x156   :  { %v267_v9 = vsub.f32 0.0, %v263_v7  ;;  %v252_v10 = vmul.f32 %v250_v8, %v233_v44  ;;  %v89_v8 = vld [vmem:[%s2644_s3 + $0x138] sm:$0xff] }
 0x157   :  { %439 = vmatpush.msra.mxu1 %v91_v63  ;;  %v1448_v63 = vld [vmem:[%s2643_s2 + $0xa8] sm:$0xff] }
 0x158   :  { %v269_v58 = vsel %vm265_vm12, %v263_v7, %v267_v9  ;;  %v262_v12 = vmul.f32 %v1623_v11, %v252_v10  ;;  %v88_v9 = vld [vmem:[%s2644_s3 + $0x130] sm:$0xff]  ;;  %v87_v10 = vld [vmem:[%s2644_s3 + $0x128] sm:$0xff]  ;;  %v86_v11 = vld [vmem:[%s2644_s3 + $0x120] sm:$0xff] }
 0x159   :  { %v273_v14 = vadd.f32 1.0, %v269_v58  ;;  %440 = vmatpush.msra.mxu1 %v90_v6  ;;  %v1446_v6 = vld [vmem:[%s2643_s2 + $0x88] sm:$0xff] }
 0x15a   :  { %v264_v15 = vsub.f32 1.0, %v262_v12 }
 0x15b   :  { %v275_v16 = vmul.f32 %v273_v14, %v271_v13  ;;  %441 = vmatpush.msra.mxu1 %v89_v8  ;;  %v85_v13 = vld [vmem:[%s2644_s3 + $0x118] sm:$0xff] }
 0x15c   :  { %v268_v17 = vsub.f32 0.0, %v264_v15 }
 0x15d   :  { %293 = vmatmul.f32.vlgmr.msra.gmra.mxu3 %v275_v16  ;;  %442 = vmatpush.msra.mxu1 %v88_v9 }
 0x15e   :  { %v270_v18 = vsel %vm266_vm13, %v264_v15, %v268_v17  ;;  %v84_v15 = vld [vmem:[%s2644_s3 + $0x110] sm:$0xff] }
 0x15f   :  { %v274_v20 = vadd.f32 1.0, %v270_v18  ;;  %443 = vmatpush.msra.mxu1 %v87_v10 }
 0x161   :  { %v276_v21 = vmul.f32 %v274_v20, %v272_v19  ;;  %444 = vmatpush.msra.mxu1 %v86_v11  ;;  %v83_v19 = vld [vmem:[%s2644_s3 + $0x108] sm:$0xff]  ;;  %v82_v20 = vld [vmem:[%s2644_s3 + $0x100] sm:$0xff] }
 0x163   :  { %313 = vmatmul.f32.vlgmr.msrb.gmra.mxu0 %v276_v21  ;;  %445 = vmatpush.msra.mxu1 %v85_v13 }
 0x165   :  { %446 = vmatpush.msra.mxu1 %v84_v15 }
 0x167   :  { %447 = vmatpush.msra.mxu1 %v83_v19  ;;  %v1509_v19 = vld [vmem:[%s2645_s4 + $0x6] sm:$0x3] }
 0x169   :  { %448 = vmatpush.msra.mxu1 %v82_v20  ;;  %v1492_v20 = vld [vmem:[%s2644_s3 + $0x278] sm:$0xff] }
 0x1e0   :  { %v294_v55 = vpop.f32.mrf.mxu3  ;;  %v314_v22 = vpop.f32.mrf.mxu0 }
 0x1e1   :  { %v315_v23 = vadd.f32 %v314_v22, %v294_v55  ;;  %v49_v22 = vld [vmem:[%s2643_s2 + $0x78] sm:$0xff] }
 0x1e2   :  { %476 = vmatpush.msrb.mxu2 %v49_v22  ;;  %v1490_v22 = vld [vmem:[%s2644_s3 + $0x268] sm:$0xff] }
 0x1e3   :  { %v317_v25 = vadd.f32 %v315_v23, %v1782_v4  ;;  %v48_v23 = vld [vmem:[%s2643_s2 + $0x58] sm:$0xff] }
 0x1e4   :  { %477 = vmatpush.msrb.mxu2 %v48_v23 }
 0x1e5   :  { %v1971_v26 = vadd.f32 %v1602_v24, %v317_v25 }
 0x1e6   :  { %478 = vmatpush.msrb.mxu2 %v47_v50  ;;  %v1470_v50 = vld [vmem:[%s2644_s3 + $0x1c8] sm:$0xff] }
 0x1e7   :  { %1441 = vmatmul.msk.f32.vlgmr.msrb.gmra.mxu1 %vm104_vm0, %v1971_v26  ;;  %v322_v27 = vmul.f32 %v1971_v26, %v1971_v26 }
 0x1ef   :  { %1442 = vmatmul.msk.f32.gmra.mxu1 %vm104_vm0, %v322_v27 }
 0x264   :  { %v346_v32 = vpop.f32.mrf.mxu1 }
 0x265   :  { %v353_v33 = vmul.f32 %v346_v32, %v346_v32  ;;  %v352_v47 = vsub.f32 %v1971_v26, %v346_v32 }
 0x26c   :  { %v349_v34 = vpop.f32.mrf.mxu1 }
 0x26d   :  { %v354_v35 = vsub.f32 %v349_v34, %v353_v33 }
 0x26f   :  { %v355_v36 = vadd.f32 1e-05, %v354_v35 }
 0x271   :  { %1624 = vrsqrt.f32 %v355_v36  ;;  %vm362_vm15 = vweird.f32 %v355_v36 }
 0x277   :  { %v1625_v37 = vpop.eup %1624 }
 0x278   :  { %v357_v40 = vmul.f32 %v1625_v37, %v355_v36  ;;  %vm363_vm14 = vweird.f32 %v1625_v37 }
 0x279   :  { %vm364_vm1 = vmor %vm362_vm15, %vm363_vm14 }
 0x27a   :  { %v358_v41 = vmul.f32 %v1625_v37, %v357_v40 }
 0x27c   :  { %v359_v43 = vmul.f32 0.5, %v358_v41 }
 0x27e   :  { %v360_v44 = vsub.f32 1.5, %v359_v43 }
 0x280   :  { %v361_v45 = vmul.f32 %v1625_v37, %v360_v44 }
 0x282   :  { %v365_v48 = vsel %vm364_vm1, %v1625_v37, %v361_v45 }
 0x283   :  { %v366_v49 = vmul.f32 %v365_v48, %v352_v47 }
 0x285   :  { %1443 = vmatmul.msk.f32.vlgmr.msra.gmra.mxu0 %vm104_vm0, %v366_v49 }
 0x302   :  { %v390_v54 = vpop.f32.mrf.mxu0 }
 0x303   :  { %v2007_v57 = vadd.f32 %v1603_v52, %v390_v54  ;;  %v46_v52 = vld [vmem:[%s2643_s2 + $0x18] sm:$0xff] }
 0x304   :  { %479 = vmatpush.msrb.mxu2 %v46_v52  ;;  %v1483_v52 = vld [vmem:[%s2644_s3 + $0x230] sm:$0xff] }
 0x305   :  { %v2013_v60 = vmul.f32 0.70710677, %v2007_v57  ;;  %v430_v48 = vmul.f32 0.5, %v2007_v57 }
 0x306   :  { %577 = vmatpush.msra.mxu2 %v1760_v0  ;;  %v1605_v0 = vld [vmem:[%s2645_s4 + $0x5] ss:$0 sm:$0xff] }
 0x307   :  { %v394_v62 = vand.u32 2147483647, %v2013_v60  ;;  %vm427_vm6 = vcmp.ge.f32.partialorder %v2013_v60, 0.0  ;;  %v1452_v60 = vld [vmem:[%s2643_s2 + $0xe8] sm:$0xff] }
 0x308   :  { %578 = vmatpush.msra.mxu2 %v1765_v1  ;;  %643 = vmatpush.msrb.mxu0 %v1452_v60  ;;  %v1467_v60 = vld [vmem:[%s2644_s3 + $0x1b0] sm:$0xff] }
 0x309   :  { %v395_v5 = vmul.f32 0.3275911, %v394_v62  ;;  %v421_v27 = vsub.f32 0.0, %v394_v62 }
 0x30a   :  { %579 = vmatpush.msra.mxu2 %v1771_v2  ;;  %644 = vmatpush.msrb.mxu0 %v1450_v61  ;;  %v1480_v61 = vld [vmem:[%s2644_s3 + $0x218] sm:$0xff] }
 0x30b   :  { %v396_v7 = vadd.f32 1.0, %v395_v5  ;;  %v422_v30 = vmul.f32 %v421_v27, %v394_v62  ;;  %v1447_v62 = vld [vmem:[%s2643_s2 + $0xa0] sm:$0xff] }
 0x30c   :  { %580 = vmatpush.msra.mxu2 %v1776_v3  ;;  %v1445_v5 = vld [vmem:[%s2643_s2 + $0x80] sm:$0xff]  ;;  %645 = vmatpush.msrb.mxu0 %v1448_v63  ;;  %v1466_v63 = vld [vmem:[%s2644_s3 + $0x1a8] sm:$0xff] }
 0x30d   :  { %1626 = vrcp.f32 %v396_v7  ;;  %v408_v16 = vand.u32 2147483648, %v396_v7  ;;  %v406_v18 = vand.u32 2147483647, %v396_v7  ;;  %vm402_vm3 = vweird.f32 %v396_v7  ;;  %v1489_v27 = vld [vmem:[%s2644_s3 + $0x260] sm:$0xff] }
 0x30e   :  { %v423_v33 = vmul.f32 1.442695, %v422_v30  ;;  %646 = vmatpush.msrb.mxu0 %v1446_v6  ;;  %v1475_v30 = vld [vmem:[%s2644_s3 + $0x1f0] sm:$0xff] }
 0x30f   :  { %v409_v55 = vor.u32 1.1754944e-38, %v408_v16  ;;  %vm407_vm5 = vcmp.eq.f32.partialorder %v406_v18, 8.507059e+37 }
 0x310   :  { %1628 = vpow2.f32 %v423_v33  ;;  %795 = vmatpush.msra.mxu0 %v1940_v38  ;;  %v1474_v33 = vld [vmem:[%s2644_s3 + $0x1e8] sm:$0xff] }
 0x312   :  { %796 = vmatpush.msra.mxu0 %v1952_v42 }
 0x313   :  { %v1627_v58 = vpop.eup %1626 }
 0x314   :  { %v398_v12 = vmul.f32 %v1627_v58, %v396_v7  ;;  %vm403_vm2 = vweird.f32 %v1627_v58  ;;  %797 = vmatpush.msra.mxu0 %v1958_v39 }
 0x315   :  { %vm404_vm4 = vmor %vm402_vm3, %vm403_vm2 }
 0x316   :  { %v399_v14 = vsub.f32 1.0, %v398_v12  ;;  %v1629_v41 = vpop.eup %1628  ;;  %798 = vmatpush.msra.mxu0 %v1964_v51 }
 0x318   :  { %v400_v17 = vmul.f32 %v1627_v58, %v399_v14 }
 0x31a   :  { %v401_v21 = vadd.f32 %v1627_v58, %v400_v17 }
 0x31c   :  { %v405_v24 = vsel %vm404_vm4, %v1627_v58, %v401_v21  ;;  %v605_v21 = vperm.slane %v1509_v19, 1 }
 0x31d   :  { %v410_v25 = vsel %vm407_vm5, %v409_v55, %v405_v24  ;;  %v1491_v55 = vld [vmem:[%s2644_s3 + $0x270] sm:$0xff] }
 0x31e   :  { %v412_v28 = vmul.f32 1.0614054, %v410_v25 }
 0x320   :  { %v413_v29 = vadd.f32 -1.4531521, %v412_v28 }
 0x322   :  { %v414_v31 = vmul.f32 %v413_v29, %v410_v25  ;;  %v604_v29 = vperm.slane %v1509_v19, 0 }
 0x324   :  { %v415_v32 = vadd.f32 1.4214138, %v414_v31  ;;  %v1488_v31 = vld [vmem:[%s2644_s3 + $0x258] sm:$0xff] }
 0x326   :  { %v416_v34 = vmul.f32 %v415_v32, %v410_v25 }
 0x328   :  { %v417_v35 = vadd.f32 -0.28449672, %v416_v34  ;;  %v1487_v34 = vld [vmem:[%s2644_s3 + $0x250] sm:$0xff] }
 0x32a   :  { %v418_v36 = vmul.f32 %v417_v35, %v410_v25 }
 0x32c   :  { %v419_v37 = vadd.f32 0.2548296, %v418_v36 }
 0x32e   :  { %v420_v40 = vmul.f32 %v419_v37, %v410_v25  ;;  %v1476_v25 = vld [vmem:[%s2644_s3 + $0x1f8] sm:$0xff] }
 0x330   :  { %v425_v43 = vmul.f32 %v1629_v41, %v420_v40  ;;  %v1473_v40 = vld [vmem:[%s2644_s3 + $0x1e0] sm:$0xff]  ;;  %v1486_v41 = vld [vmem:[%s2644_s3 + $0x248] sm:$0xff] }
 0x332   :  { %v426_v44 = vsub.f32 1.0, %v425_v43 }
 0x334   :  { %v428_v45 = vsub.f32 0.0, %v426_v44 }
 0x336   :  { %v429_v47 = vsel %vm427_vm6, %v426_v44, %v428_v45  ;;  %v1472_v45 = vld [vmem:[%s2644_s3 + $0x1d8] sm:$0xff] }
 0x337   :  { %v431_v49 = vadd.f32 1.0, %v429_v47  ;;  %v1485_v47 = vld [vmem:[%s2644_s3 + $0x240] sm:$0xff] }
 0x339   :  { %v432_v46 = vmul.f32 %v431_v49, %v430_v48  ;;  %v1471_v48 = vld [vmem:[%s2644_s3 + $0x1d0] sm:$0xff]  ;;  %v1484_v49 = vld [vmem:[%s2644_s3 + $0x238] sm:$0xff] }
 0x33b   :  { %449 = vmatmul.f32.vlgmr.msra.gmra.mxu1 %v432_v46 }
 0x3b8   :  { %v450_v54 = vpop.f32.mrf.mxu1 }
 0x3b9   :  { %v453_v56 = vadd.f32 %v450_v54, %v1971_v26  ;;  %v1451_v26 = vld [vmem:[%s2643_s2 + $0xe0] sm:$0xff] }
 0x3ba   :  { %623 = vmatpush.msrb.mxu3 %v1451_v26  ;;  %v1469_v54 = vld [vmem:[%s2644_s3 + $0x1c0] sm:$0xff] }
 0x3bb   :  { %v457_v57 = vadd.f32 %v1604_v53, %v453_v56  ;;  %v1482_v56 = vld [vmem:[%s2644_s3 + $0x228] sm:$0xff] }
 0x3bd   :  { %1444 = vmatmul.msk.f32.vlgmr.msrb.gmra.mxu2 %vm104_vm0, %v457_v57 }
 0x3be   :  { %731 = vmatpush.msrb.mxu2 %v1476_v25  ;;  %v1461_v25 = vld [vmem:[%s2644_s3 + $0x180] sm:$0xff] }
 0x3c0   :  { %732 = vmatpush.msrb.mxu2 %v1475_v30 }
 0x3c2   :  { %733 = vmatpush.msrb.mxu2 %v1474_v33 }
 0x3c4   :  { %734 = vmatpush.msrb.mxu2 %v1473_v40 }
 0x3c6   :  { %735 = vmatpush.msrb.mxu2 %v1472_v45 }
 0x3c8   :  { %736 = vmatpush.msrb.mxu2 %v1471_v48 }
 0x3ca   :  { %737 = vmatpush.msrb.mxu2 %v1470_v50 }
 0x3cc   :  { %738 = vmatpush.msrb.mxu2 %v1469_v54 }
 0x440   :  { %v481_v59 = vpop.f32.mrf.mxu2 }
 0x441   :  { %v2075_v1 = vadd.f32 %v1605_v0, %v481_v59  ;;  %v1468_v59 = vld [vmem:[%s2644_s3 + $0x1b8] sm:$0xff] }
 0x442   :  { %739 = vmatpush.msrb.mxu2 %v1468_v59 }
 0x443   :  { %v2079_v2 = vsub.f32 %v1782_v4, %v2075_v1  ;;  %v1449_v4 = vld [vmem:[%s2643_s2 + $0xc0] sm:$0xff] }
 0x444   :  { %624 = vmatpush.msrb.mxu3 %v1449_v4  ;;  %740 = vmatpush.msrb.mxu2 %v1467_v60 }
 0x445   :  { %1514 = vmatmul.msk.f32.vlgmr.msra.gmra.mxu2 %vm104_vm0, %v2079_v2  ;;  %v558_v3 = vmul.f32 %v2079_v2, %v2079_v2 }
 0x446   :  { %625 = vmatpush.msrb.mxu3 %v1447_v62  ;;  %741 = vmatpush.msrb.mxu2 %v1466_v63 }
 0x448   :  { %626 = vmatpush.msrb.mxu3 %v1445_v5  ;;  %v1479_v5 = vld [vmem:[%s2644_s3 + $0x210] sm:$0xff] }
 0x44a   :  { %751 = vmatpush.msra.mxu3 %v1492_v20 }
 0x44c   :  { %752 = vmatpush.msra.mxu3 %v1491_v55 }
 0x44d   :  { %1515 = vmatmul.msk.f32.gmra.mxu2 %vm104_vm0, %v558_v3  ;;  %v1481_v3 = vld [vmem:[%s2644_s3 + $0x220] sm:$0xff] }
 0x44e   :  { %753 = vmatpush.msra.mxu3 %v1490_v22  ;;  %v1462_v22 = vld [vmem:[%s2644_s3 + $0x188] sm:$0xff] }
 0x450   :  { %754 = vmatpush.msra.mxu3 %v1489_v27 }
 0x452   :  { %755 = vmatpush.msra.mxu3 %v1488_v31 }
 0x454   :  { %756 = vmatpush.msra.mxu3 %v1487_v34 }
 0x456   :  { %757 = vmatpush.msra.mxu3 %v1486_v41 }
 0x458   :  { %758 = vmatpush.msra.mxu3 %v1485_v47 }
 0x45a   :  { %759 = vmatpush.msra.mxu3 %v1484_v49 }
 0x45c   :  { %760 = vmatpush.msra.mxu3 %v1483_v52 }
 0x45e   :  { %761 = vmatpush.msra.mxu3 %v1482_v56 }
 0x460   :  { %762 = vmatpush.msra.mxu3 %v1481_v3 }
 0x462   :  { %763 = vmatpush.msra.mxu3 %v1480_v61 }
 0x464   :  { %764 = vmatpush.msra.mxu3 %v1479_v5 }
 0x4c8   :  { %v582_v7 = vpop.f32.mrf.mxu2 }
 0x4c9   :  { %v589_v8 = vmul.f32 %v582_v7, %v582_v7  ;;  %v588_v38 = vsub.f32 %v2079_v2, %v582_v7 }
 0x4d0   :  { %v585_v9 = vpop.f32.mrf.mxu2 }
 0x4d1   :  { %v590_v10 = vsub.f32 %v585_v9, %v589_v8  ;;  %v1465_v8 = vld [vmem:[%s2644_s3 + $0x1a0] sm:$0xff]  ;;  %v1478_v9 = vld [vmem:[%s2644_s3 + $0x208] sm:$0xff] }
 0x4d2   :  { %742 = vmatpush.msrb.mxu2 %v1465_v8  ;;  %765 = vmatpush.msra.mxu3 %v1478_v9 }
 0x4d3   :  { %v591_v11 = vadd.f32 1e-05, %v590_v10 }
 0x4d5   :  { %1630 = vrsqrt.f32 %v591_v11  ;;  %vm598_vm8 = vweird.f32 %v591_v11 }
 0x4db   :  { %v1631_v58 = vpop.eup %1630 }
 0x4dc   :  { %v593_v12 = vmul.f32 %v1631_v58, %v591_v11  ;;  %vm599_vm7 = vweird.f32 %v1631_v58 }
 0x4dd   :  { %vm600_vm9 = vmor %vm598_vm8, %vm599_vm7 }
 0x4de   :  { %v594_v13 = vmul.f32 %v1631_v58, %v593_v12 }
 0x4e0   :  { %v595_v14 = vmul.f32 0.5, %v594_v13  ;;  %v1464_v13 = vld [vmem:[%s2644_s3 + $0x198] sm:$0xff] }
 0x4e1   :  { %743 = vmatpush.msrb.mxu2 %v1464_v13 }
 0x4e2   :  { %v596_v15 = vsub.f32 1.5, %v595_v14  ;;  %v1477_v14 = vld [vmem:[%s2644_s3 + $0x200] sm:$0xff] }
 0x4e3   :  { %766 = vmatpush.msra.mxu3 %v1477_v14 }
 0x4e4   :  { %v597_v16 = vmul.f32 %v1631_v58, %v596_v15 }
 0x4e6   :  { %v601_v17 = vsel %vm600_vm9, %v1631_v58, %v597_v16 }
 0x4e7   :  { %v602_v18 = vmul.f32 %v601_v17, %v588_v38 }
 0x4e9   :  { %1516 = vmatmul.msk.f32.vlgmr.msrb.gmra.mxu3 %vm104_vm0, %v602_v18  ;;  %1517 = vmatmul.msk.f32.vlgmr.msrb.gmra.mxu0 %vm104_vm0, %v602_v18  ;;  %v1463_v18 = vld [vmem:[%s2644_s3 + $0x190] sm:$0xff] }
 0x4ea   :  { %744 = vmatpush.msrb.mxu2 %v1463_v18  ;;  %v1453_v18 = vld [vmem:[%s2643_s2 + $0x90] sm:$0xff] }
 0x4ec   :  { %745 = vmatpush.msrb.mxu2 %v1462_v22 }
 0x4ee   :  { %746 = vmatpush.msrb.mxu2 %v1461_v25 }
 0x566   :  { %v648_v23 = vpop.f32.mrf.mxu0 }
 0x567   :  { %v2129_v24 = vadd.f32 %v648_v23, %v605_v21 }
 0x569   :  { %v2138_v28 = vmul.f32 0.70710677, %v2129_v24  ;;  %v726_v63 = vmul.f32 0.5, %v2129_v24  ;;  %v1606_v24 = vld [vmem:[%s2645_s4 + $0x9] ss:$0 sm:$0xff] }
 0x56b   :  { %v2147_v32 = vand.u32 2147483647, %v2138_v28  ;;  %vm720_vm3 = vcmp.ge.f32.partialorder %v2138_v28, 0.0 }
 0x56c   :  { %v628_v35 = vpop.f32.mrf.mxu3 }
 0x56d   :  { %v656_v36 = vmul.f32 0.3275911, %v2147_v32  ;;  %v2156_v37 = vadd.f32 %v628_v35, %v604_v29  ;;  %v708_v38 = vsub.f32 0.0, %v2147_v32 }
 0x56f   :  { %v658_v43 = vadd.f32 1.0, %v656_v36  ;;  %v2165_v44 = vmul.f32 0.70710677, %v2156_v37  ;;  %v710_v27 = vmul.f32 %v708_v38, %v2147_v32  ;;  %v1455_v38 = vld [vmem:[%s2643_s2 + $0xd0] sm:$0xff] }
 0x571   :  { %1632 = vrcp.f32 %v658_v43  ;;  %v2180_v46 = vand.u32 2147483647, %v2165_v44  ;;  %v685_v62 = vand.u32 2147483648, %v658_v43  ;;  %v683_v7 = vand.u32 2147483647, %v658_v43 }
 0x572   :  { %vm679_vm11 = vweird.f32 %v658_v43  ;;  %v713_v40 = vmul.f32 1.442695, %v710_v27  ;;  %vm719_vm4 = vcmp.ge.f32.partialorder %v2165_v44, 0.0  ;;  %v1456_v44 = vld [vmem:[%s2643_s2 + $0xf0] sm:$0xff] }
 0x573   :  { %v655_v53 = vmul.f32 0.3275911, %v2180_v46  ;;  %v686_v58 = vor.u32 1.1754944e-38, %v685_v62  ;;  %vm684_vm13 = vcmp.eq.f32.partialorder %v683_v7, 8.507059e+37  ;;  %v707_v36 = vsub.f32 0.0, %v2180_v46  ;;  %839 = vmatpush.msrb.mxu1 %v1456_v44 }
 0x575   :  { %v657_v57 = vadd.f32 1.0, %v655_v53  ;;  %v709_v48 = vmul.f32 %v707_v36, %v2180_v46  ;;  %840 = vmatpush.msrb.mxu1 %v1455_v38  ;;  %v1508_v36 = vld [vmem:[%s2644_s3 + $0x2f8] sm:$0xff] }
 0x576   :  { %887 = vmatpush.msrb.mxu0 %v1508_v36  ;;  %v1663_v36 = vld [vmem:[%s2642_s1 + $0x10] sm:$0xff] }
 0x577   :  { %v1633_v0 = vpop.eup %1632  ;;  %1634 = vrcp.f32 %v657_v57  ;;  %v670_v20 = vand.u32 2147483648, %v657_v57  ;;  %v668_v55 = vand.u32 2147483647, %v657_v57  ;;  %vm664_vm15 = vweird.f32 %v657_v57 }
 0x578   :  { %v675_v26 = vmul.f32 %v1633_v0, %v658_v43  ;;  %vm680_vm10 = vweird.f32 %v1633_v0  ;;  %1636 = vpow2.f32 %v713_v40  ;;  %v711_v53 = vmul.f32 1.442695, %v709_v48  ;;  %v1507_v40 = vld [vmem:[%s2644_s3 + $0x2f0] sm:$0xff] }
 0x579   :  { %vm681_vm12 = vmor %vm679_vm11, %vm680_vm10  ;;  %v671_v31 = vor.u32 1.1754944e-38, %v670_v20  ;;  %vm669_vm2 = vcmp.eq.f32.partialorder %v668_v55, 8.507059e+37  ;;  %888 = vmatpush.msrb.mxu0 %v1507_v40  ;;  %v1664_v40 = vld [vmem:[%s2642_s1 + $0x8] sm:$0xff] }
 0x57a   :  { %v676_v4 = vsub.f32 1.0, %v675_v26  ;;  %1638 = vpow2.f32 %v711_v53  ;;  %v1502_v53 = vld [vmem:[%s2644_s3 + $0x2c8] sm:$0xff] }
 0x57c   :  { %v677_v6 = vmul.f32 %v1633_v0, %v676_v4 }
 0x57d   :  { %v1635_v10 = vpop.eup %1634 }
 0x57e   :  { %v678_v11 = vadd.f32 %v1633_v0, %v677_v6  ;;  %v660_v12 = vmul.f32 %v1635_v10, %v657_v57  ;;  %vm665_vm14 = vweird.f32 %v1635_v10  ;;  %v1637_v57 = vpop.eup %1636 }
 0x57f   :  { %vm666_vm1 = vmor %vm664_vm15, %vm665_vm14 }
 0x580   :  { %v682_v15 = vsel %vm681_vm12, %v1633_v0, %v678_v11  ;;  %v661_v17 = vsub.f32 1.0, %v660_v12  ;;  %v1639_v46 = vpop.eup %1638  ;;  %v725_v11 = vmul.f32 0.5, %v2156_v37 }
 0x581   :  { %v687_v16 = vsel %vm684_vm13, %v686_v58, %v682_v15 }
 0x582   :  { %v690_v19 = vmul.f32 1.0614054, %v687_v16  ;;  %v662_v21 = vmul.f32 %v1635_v10, %v661_v17  ;;  %v1454_v17 = vld [vmem:[%s2643_s2 + $0xb0] sm:$0xff] }
 0x583   :  { %841 = vmatpush.msrb.mxu1 %v1454_v17 }
 0x584   :  { %v692_v23 = vadd.f32 -1.4531521, %v690_v19  ;;  %v663_v29 = vadd.f32 %v1635_v10, %v662_v21 }
 0x585   :  { %842 = vmatpush.msrb.mxu1 %v1453_v18 }
 0x586   :  { %v694_v30 = vmul.f32 %v692_v23, %v687_v16  ;;  %v667_v33 = vsel %vm666_vm1, %v1635_v10, %v663_v29 }
 0x587   :  { %v672_v35 = vsel %vm669_vm2, %v671_v31, %v667_v33 }
 0x588   :  { %v696_v34 = vadd.f32 1.4214138, %v694_v30  ;;  %v689_v41 = vmul.f32 1.0614054, %v672_v35 }
 0x58a   :  { %v698_v43 = vmul.f32 %v696_v34, %v687_v16  ;;  %v691_v45 = vadd.f32 -1.4531521, %v689_v41  ;;  %v1607_v41 = vld [vmem:[%s2645_s4 + $0x8] ss:$0 sm:$0xff] }
 0x58c   :  { %v700_v47 = vadd.f32 -0.28449672, %v698_v43  ;;  %v693_v32 = vmul.f32 %v691_v45, %v672_v35  ;;  %v1506_v43 = vld [vmem:[%s2644_s3 + $0x2e8] sm:$0xff] }
 0x58d   :  { %889 = vmatpush.msrb.mxu0 %v1506_v43  ;;  %v1608_v43 = vld [vmem:[%s2645_s4 + $0xa] ss:$0 sm:$0xff] }
 0x58e   :  { %v702_v49 = vmul.f32 %v700_v47, %v687_v16  ;;  %v695_v50 = vadd.f32 1.4214138, %v693_v32  ;;  %v1505_v47 = vld [vmem:[%s2644_s3 + $0x2e0] sm:$0xff]  ;;  %v1504_v32 = vld [vmem:[%s2644_s3 + $0x2d8] sm:$0xff] }
 0x58f   :  { %890 = vmatpush.msrb.mxu0 %v1505_v47 }
 0x590   :  { %v704_v52 = vadd.f32 0.2548296, %v702_v49  ;;  %v697_v54 = vmul.f32 %v695_v50, %v672_v35  ;;  %v1503_v50 = vld [vmem:[%s2644_s3 + $0x2d0] sm:$0xff] }
 0x591   :  { %891 = vmatpush.msrb.mxu0 %v1504_v32  ;;  %v1609_v32 = vld [vmem:[%s2645_s4 + $0xb] ss:$0 sm:$0xff] }
 0x592   :  { %v706_v56 = vmul.f32 %v704_v52, %v687_v16  ;;  %v699_v0 = vadd.f32 -0.28449672, %v697_v54 }
 0x593   :  { %892 = vmatpush.msrb.mxu0 %v1503_v50 }
 0x594   :  { %v716_v59 = vmul.f32 %v1637_v57, %v706_v56  ;;  %v701_v3 = vmul.f32 %v699_v0, %v672_v35  ;;  %v1501_v56 = vld [vmem:[%s2644_s3 + $0x2c0] sm:$0xff]  ;;  %v1500_v0 = vld [vmem:[%s2644_s3 + $0x2b8] sm:$0xff] }
 0x595   :  { %893 = vmatpush.msrb.mxu0 %v1502_v53  ;;  %v1528_v53 = vld [vmem:[%s2643_s2 + $0x160] sm:$0xff] }
 0x596   :  { %v718_v26 = vsub.f32 1.0, %v716_v59  ;;  %v703_v60 = vadd.f32 0.2548296, %v701_v3  ;;  %v1499_v59 = vld [vmem:[%s2644_s3 + $0x2b0] sm:$0xff]  ;;  %v1498_v3 = vld [vmem:[%s2644_s3 + $0x2a8] sm:$0xff]  ;;  %1077 = vmatpush.msra.mxu2 %v1528_v53  ;;  %v1561_v53 = vld [vmem:[%s2644_s3 + $0x3b8] sm:$0xff] }
 0x597   :  { %894 = vmatpush.msrb.mxu0 %v1501_v56  ;;  %v1522_v56 = vld [vmem:[%s2643_s2 + $0x100] sm:$0xff] }
 0x598   :  { %v722_v4 = vsub.f32 0.0, %v718_v26  ;;  %v705_v61 = vmul.f32 %v703_v60, %v672_v35 }
 0x599   :  { %895 = vmatpush.msrb.mxu0 %v1500_v0  ;;  %v1529_v0 = vld [vmem:[%s2643_s2 + $0x168] sm:$0xff] }
 0x59a   :  { %v724_v62 = vsel %vm720_vm3, %v718_v26, %v722_v4  ;;  %v715_v6 = vmul.f32 %v1639_v46, %v705_v61  ;;  %v1497_v26 = vld [vmem:[%s2644_s3 + $0x2a0] sm:$0xff]  ;;  %v1496_v61 = vld [vmem:[%s2644_s3 + $0x298] sm:$0xff] }
 0x59b   :  { %v728_v5 = vadd.f32 1.0, %v724_v62  ;;  %896 = vmatpush.msrb.mxu0 %v1499_v59  ;;  %v1495_v62 = vld [vmem:[%s2644_s3 + $0x290] sm:$0xff]  ;;  %v1527_v59 = vld [vmem:[%s2643_s2 + $0x148] sm:$0xff] }
 0x59c   :  { %v717_v8 = vsub.f32 1.0, %v715_v6 }
 0x59d   :  { %v730_v7 = vmul.f32 %v728_v5, %v726_v63  ;;  %897 = vmatpush.msrb.mxu0 %v1498_v3  ;;  %v1525_v3 = vld [vmem:[%s2643_s2 + $0x128] sm:$0xff] }
 0x59e   :  { %v721_v9 = vsub.f32 0.0, %v717_v8 }
 0x59f   :  { %767 = vmatmul.f32.vlgmr.msra.gmra.mxu3 %v730_v7  ;;  %898 = vmatpush.msrb.mxu0 %v1497_v26  ;;  %v1494_v7 = vld [vmem:[%s2644_s3 + $0x288] sm:$0xff] }
 0x5a0   :  { %v723_v10 = vsel %vm719_vm4, %v717_v8, %v721_v9  ;;  %v1493_v8 = vld [vmem:[%s2644_s3 + $0x280] sm:$0xff]  ;;  %v1523_v26 = vld [vmem:[%s2643_s2 + $0x108] sm:$0xff] }
 0x5a1   :  { %v727_v58 = vadd.f32 1.0, %v723_v10  ;;  %899 = vmatpush.msrb.mxu0 %v1496_v61 }
 0x5a3   :  { %v729_v12 = vmul.f32 %v727_v58, %v725_v11  ;;  %900 = vmatpush.msrb.mxu0 %v1495_v62  ;;  %v1460_v11 = vld [vmem:[%s2643_s2 + $0xf8] sm:$0xff] }
 0x5a4   :  { %v1459_v58 = vld [vmem:[%s2643_s2 + $0xd8] sm:$0xff]  ;;  %930 = vmatpush.msra.mxu1 %v1460_v11 }
 0x5a5   :  { %747 = vmatmul.f32.vlgmr.msrb.gmra.mxu2 %v729_v12  ;;  %901 = vmatpush.msrb.mxu0 %v1494_v7 }
 0x5a6   :  { %931 = vmatpush.msra.mxu1 %v1459_v58  ;;  %v1666_v58 = vld [vmem:[%s2642_s1 + $0x38] sm:$0xff] }
 0x5a7   :  { %902 = vmatpush.msrb.mxu0 %v1493_v8 }
 0x622   :  { %v768_v28 = vpop.f32.mrf.mxu3 }
 0x628   :  { %v748_v13 = vpop.f32.mrf.mxu2 }
 0x629   :  { %v769_v14 = vadd.f32 %v768_v28, %v748_v13 }
 0x62b   :  { %v771_v15 = vadd.f32 %v769_v14, %v2079_v2 }
 0x62d   :  { %v2246_v16 = vadd.f32 %v1606_v24, %v771_v15 }
 0x62f   :  { %1518 = vmatmul.msk.f32.vlgmr.msra.gmra.mxu0 %vm104_vm0, %v2246_v16  ;;  %v776_v37 = vmul.f32 %v2246_v16, %v2246_v16 }
 0x637   :  { %1519 = vmatmul.msk.f32.gmra.mxu0 %vm104_vm0, %v776_v37 }
 0x6ac   :  { %v800_v19 = vpop.f32.mrf.mxu0 }
 0x6ad   :  { %v807_v20 = vmul.f32 %v800_v19, %v800_v19  ;;  %v806_v33 = vsub.f32 %v2246_v16, %v800_v19 }
 0x6b4   :  { %v803_v21 = vpop.f32.mrf.mxu0 }
 0x6b5   :  { %v808_v55 = vsub.f32 %v803_v21, %v807_v20 }
 0x6b7   :  { %v809_v22 = vadd.f32 1e-05, %v808_v55 }
 0x6b9   :  { %1640 = vrsqrt.f32 %v809_v22  ;;  %vm816_vm6 = vweird.f32 %v809_v22 }
 0x6bf   :  { %v1641_v23 = vpop.eup %1640 }
 0x6c0   :  { %v811_v25 = vmul.f32 %v1641_v23, %v809_v22  ;;  %vm817_vm5 = vweird.f32 %v1641_v23 }
 0x6c1   :  { %vm818_vm7 = vmor %vm816_vm6, %vm817_vm5 }
 0x6c2   :  { %v812_v27 = vmul.f32 %v1641_v23, %v811_v25 }
 0x6c4   :  { %v813_v29 = vmul.f32 0.5, %v812_v27 }
 0x6c6   :  { %v814_v30 = vsub.f32 1.5, %v813_v29 }
 0x6c8   :  { %v815_v31 = vmul.f32 %v1641_v23, %v814_v30 }
 0x6ca   :  { %v819_v34 = vsel %vm818_vm7, %v1641_v23, %v815_v31 }
 0x6cb   :  { %v820_v35 = vmul.f32 %v819_v34, %v806_v33  ;;  %v1458_v33 = vld [vmem:[%s2643_s2 + $0xb8] sm:$0xff] }
 0x6cc   :  { %932 = vmatpush.msra.mxu1 %v1458_v33  ;;  %v1457_v34 = vld [vmem:[%s2643_s2 + $0x98] sm:$0xff] }
 0x6cd   :  { %1520 = vmatmul.msk.f32.vlgmr.msrb.gmra.mxu1 %vm104_vm0, %v820_v35  ;;  %v1662_v35 = vld [vmem:[%s2642_s1 + $0x18] sm:$0xff] }
 0x6ce   :  { %933 = vmatpush.msra.mxu1 %v1457_v34  ;;  %v1544_v34 = vld [vmem:[%s2644_s3 + $0x330] sm:$0xff] }
 0x6d0   :  { %1031 = vmatpush.msrb.mxu1 %v1662_v35  ;;  %v1564_v35 = vld [vmem:[%s2644_s3 + $0x3d0] sm:$0xff] }
 0x6d2   :  { %1032 = vmatpush.msrb.mxu1 %v1663_v36 }
 0x6d4   :  { %1033 = vmatpush.msrb.mxu1 %v1664_v40  ;;  %v1543_v40 = vld [vmem:[%s2644_s3 + $0x328] sm:$0xff] }
 0x74a   :  { %v844_v45 = vpop.f32.mrf.mxu1 }
 0x74b   :  { %v2282_v48 = vadd.f32 %v1607_v41, %v844_v45  ;;  %v1665_v41 = vld [vmem:[%s2642_s1] sm:$0xff] }
 0x74c   :  { %1034 = vmatpush.msrb.mxu1 %v1665_v41  ;;  %v1563_v41 = vld [vmem:[%s2644_s3 + $0x3c8] sm:$0xff] }
 0x74d   :  { %v2288_v49 = vmul.f32 0.70710677, %v2282_v48  ;;  %v884_v29 = vmul.f32 0.5, %v2282_v48 }
 0x74f   :  { %v848_v52 = vand.u32 2147483647, %v2288_v49  ;;  %vm881_vm12 = vcmp.ge.f32.partialorder %v2288_v49, 0.0 }
 0x751   :  { %v849_v54 = vmul.f32 0.3275911, %v848_v52  ;;  %v875_v13 = vsub.f32 0.0, %v848_v52 }
 0x753   :  { %v850_v57 = vadd.f32 1.0, %v849_v54  ;;  %v876_v15 = vmul.f32 %v875_v13, %v848_v52  ;;  %v1526_v54 = vld [vmem:[%s2643_s2 + $0x140] sm:$0xff] }
 0x754   :  { %1078 = vmatpush.msra.mxu2 %v1526_v54 }
 0x755   :  { %1642 = vrcp.f32 %v850_v57  ;;  %v862_v63 = vand.u32 2147483648, %v850_v57  ;;  %v860_v6 = vand.u32 2147483647, %v850_v57  ;;  %vm856_vm9 = vweird.f32 %v850_v57 }
 0x756   :  { %v877_v38 = vmul.f32 1.442695, %v876_v15 }
 0x757   :  { %v863_v10 = vor.u32 1.1754944e-38, %v862_v63  ;;  %vm861_vm11 = vcmp.eq.f32.partialorder %v860_v6, 8.507059e+37 }
 0x758   :  { %1644 = vpow2.f32 %v877_v38 }
 0x75b   :  { %v1643_v60 = vpop.eup %1642 }
 0x75c   :  { %v852_v4 = vmul.f32 %v1643_v60, %v850_v57  ;;  %vm857_vm8 = vweird.f32 %v1643_v60 }
 0x75d   :  { %vm858_vm10 = vmor %vm856_vm9, %vm857_vm8 }
 0x75e   :  { %v853_v46 = vsub.f32 1.0, %v852_v4  ;;  %v1645_v55 = vpop.eup %1644 }
 0x760   :  { %v854_v5 = vmul.f32 %v1643_v60, %v853_v46 }
 0x762   :  { %v855_v9 = vadd.f32 %v1643_v60, %v854_v5 }
 0x764   :  { %v859_v12 = vsel %vm858_vm10, %v1643_v60, %v855_v9 }
 0x765   :  { %v864_v28 = vsel %vm861_vm11, %v863_v10, %v859_v12  ;;  %v1586_v12 = vld [vmem:[%s2645_s4 + $0xc] sm:$0x3] }
 0x766   :  { %v866_v14 = vmul.f32 1.0614054, %v864_v28  ;;  %v1058_v13 = vperm.slane %v1586_v12, 0 }
 0x768   :  { %v867_v24 = vadd.f32 -1.4531521, %v866_v14 }
 0x76a   :  { %v868_v37 = vmul.f32 %v867_v24, %v864_v28  ;;  %v1550_v24 = vld [vmem:[%s2644_s3 + $0x360] sm:$0xff] }
 0x76c   :  { %v869_v44 = vadd.f32 1.4214138, %v868_v37  ;;  %v1549_v37 = vld [vmem:[%s2644_s3 + $0x358] sm:$0xff] }
 0x76e   :  { %v870_v17 = vmul.f32 %v869_v44, %v864_v28  ;;  %v1569_v44 = vld [vmem:[%s2644_s3 + $0x3f8] sm:$0xff] }
 0x76f   :  { %1205 = vmatpush.msrb.mxu3 %v1569_v44 }
 0x770   :  { %v871_v18 = vadd.f32 -0.28449672, %v870_v17  ;;  %v1059_v17 = vperm.slane %v1586_v12, 1 }
 0x772   :  { %v872_v19 = vmul.f32 %v871_v18, %v864_v28  ;;  %v1548_v18 = vld [vmem:[%s2644_s3 + $0x350] sm:$0xff] }
 0x774   :  { %v873_v20 = vadd.f32 0.2548296, %v872_v19  ;;  %v1568_v19 = vld [vmem:[%s2644_s3 + $0x3f0] sm:$0xff] }
 0x775   :  { %1206 = vmatpush.msrb.mxu3 %v1568_v19 }
 0x776   :  { %v874_v21 = vmul.f32 %v873_v20, %v864_v28  ;;  %v1553_v28 = vld [vmem:[%s2644_s3 + $0x378] sm:$0xff] }
 0x778   :  { %v879_v22 = vmul.f32 %v1645_v55, %v874_v21  ;;  %v1547_v21 = vld [vmem:[%s2644_s3 + $0x348] sm:$0xff] }
 0x779   :  { %v1567_v55 = vld [vmem:[%s2644_s3 + $0x3e8] sm:$0xff] }
 0x77a   :  { %v880_v23 = vsub.f32 1.0, %v879_v22  ;;  %1207 = vmatpush.msrb.mxu3 %v1567_v55 }
 0x77c   :  { %v882_v25 = vsub.f32 0.0, %v880_v23 }
 0x77e   :  { %v883_v27 = vsel %vm881_vm12, %v880_v23, %v882_v25 }
 0x77f   :  { %v885_v30 = vadd.f32 1.0, %v883_v27  ;;  %v1546_v27 = vld [vmem:[%s2644_s3 + $0x340] sm:$0xff] }
 0x781   :  { %v886_v31 = vmul.f32 %v885_v30, %v884_v29  ;;  %v1566_v29 = vld [vmem:[%s2644_s3 + $0x3e0] sm:$0xff]  ;;  %v1545_v30 = vld [vmem:[%s2644_s3 + $0x338] sm:$0xff] }
 0x782   :  { %1208 = vmatpush.msrb.mxu3 %v1566_v29 }
 0x783   :  { %903 = vmatmul.f32.vlgmr.msrb.gmra.mxu0 %v886_v31  ;;  %v1565_v31 = vld [vmem:[%s2644_s3 + $0x3d8] sm:$0xff] }
 0x784   :  { %1209 = vmatpush.msrb.mxu3 %v1565_v31 }
 0x786   :  { %1210 = vmatpush.msrb.mxu3 %v1564_v35 }
 0x788   :  { %1211 = vmatpush.msrb.mxu3 %v1563_v41 }
 0x800   :  { %v904_v45 = vpop.f32.mrf.mxu0 }
 0x801   :  { %v907_v47 = vadd.f32 %v904_v45, %v2246_v16 }
 0x803   :  { %v911_v48 = vadd.f32 %v1608_v43, %v907_v47  ;;  %v1542_v47 = vld [vmem:[%s2644_s3 + $0x320] sm:$0xff] }
 0x805   :  { %1521 = vmatmul.msk.f32.vlgmr.msra.gmra.mxu1 %vm104_vm0, %v911_v48  ;;  %v1562_v48 = vld [vmem:[%s2644_s3 + $0x3c0] sm:$0xff] }
 0x806   :  { %1185 = vmatpush.msra.mxu1 %v1553_v28  ;;  %1212 = vmatpush.msrb.mxu3 %v1562_v48 }
 0x808   :  { %1213 = vmatpush.msrb.mxu3 %v1561_v53 }
 0x882   :  { %v935_v49 = vpop.f32.mrf.mxu1 }
 0x883   :  { %v2358_v50 = vadd.f32 %v1609_v32, %v935_v49 }
 0x885   :  { %v2362_v52 = vsub.f32 %v2079_v2, %v2358_v50  ;;  %v1524_v2 = vld [vmem:[%s2643_s2 + $0x120] sm:$0xff] }
 0x886   :  { %1079 = vmatpush.msra.mxu2 %v1524_v2 }
 0x887   :  { %1591 = vmatmul.msk.f32.vlgmr.msrb.gmra.mxu1 %vm104_vm0, %v2362_v52  ;;  %v1012_v16 = vmul.f32 %v2362_v52, %v2362_v52 }
 0x888   :  { %1080 = vmatpush.msra.mxu2 %v1522_v56  ;;  %v1540_v56 = vld [vmem:[%s2644_s3 + $0x310] sm:$0xff] }
 0x88a   :  { %1097 = vmatpush.msrb.mxu2 %v1529_v0 }
 0x88c   :  { %1098 = vmatpush.msrb.mxu2 %v1527_v59 }
 0x88e   :  { %1099 = vmatpush.msrb.mxu2 %v1525_v3  ;;  %v1539_v3 = vld [vmem:[%s2644_s3 + $0x308] sm:$0xff] }
 0x88f   :  { %1592 = vmatmul.msk.f32.gmra.mxu1 %vm104_vm0, %v1012_v16  ;;  %v1541_v16 = vld [vmem:[%s2644_s3 + $0x318] sm:$0xff] }
 0x890   :  { %1100 = vmatpush.msrb.mxu2 %v1523_v26  ;;  %v1559_v26 = vld [vmem:[%s2644_s3 + $0x3a8] sm:$0xff] }
 0x904   :  { %v1036_v57 = vpop.f32.mrf.mxu1 }
 0x905   :  { %v1043_v60 = vmul.f32 %v1036_v57, %v1036_v57  ;;  %v1042_v9 = vsub.f32 %v2362_v52, %v1036_v57  ;;  %v1560_v57 = vld [vmem:[%s2644_s3 + $0x3b0] sm:$0xff] }
 0x906   :  { %1214 = vmatpush.msrb.mxu3 %v1560_v57 }
 0x908   :  { %1215 = vmatpush.msrb.mxu3 %v1559_v26 }
 0x90c   :  { %v1039_v4 = vpop.f32.mrf.mxu1 }
 0x90d   :  { %v1044_v61 = vsub.f32 %v1039_v4, %v1043_v60 }
 0x90f   :  { %v1045_v46 = vadd.f32 1e-05, %v1044_v61  ;;  %v1538_v61 = vld [vmem:[%s2644_s3 + $0x300] sm:$0xff] }
 0x911   :  { %1646 = vrsqrt.f32 %v1045_v46  ;;  %vm1052_vm14 = vweird.f32 %v1045_v46 }
 0x917   :  { %v1647_v62 = vpop.eup %1646 }
 0x918   :  { %v1047_v63 = vmul.f32 %v1647_v62, %v1045_v46  ;;  %vm1053_vm13 = vweird.f32 %v1647_v62  ;;  %v1558_v46 = vld [vmem:[%s2644_s3 + $0x3a0] sm:$0xff] }
 0x919   :  { %vm1054_vm15 = vmor %vm1052_vm14, %vm1053_vm13  ;;  %1216 = vmatpush.msrb.mxu3 %v1558_v46 }
 0x91a   :  { %v1048_v5 = vmul.f32 %v1647_v62, %v1047_v63 }
 0x91c   :  { %v1049_v6 = vmul.f32 0.5, %v1048_v5 }
 0x91e   :  { %v1050_v7 = vsub.f32 1.5, %v1049_v6 }
 0x920   :  { %v1051_v8 = vmul.f32 %v1647_v62, %v1050_v7 }
 0x922   :  { %v1055_v10 = vsel %vm1054_vm15, %v1647_v62, %v1051_v8  ;;  %v1557_v8 = vld [vmem:[%s2644_s3 + $0x398] sm:$0xff] }
 0x923   :  { %v1056_v11 = vmul.f32 %v1055_v10, %v1042_v9  ;;  %1217 = vmatpush.msrb.mxu3 %v1557_v8  ;;  %v1530_v8 = vld [vmem:[%s2643_s2 + $0x110] sm:$0xff] }
 0x925   :  { %1593 = vmatmul.msk.f32.vlgmr.msra.gmra.mxu2 %vm104_vm0, %v1056_v11 }
 0x926   :  { %1249 = vmatpush.msra.mxu2 %v1666_v58 }
 0x928   :  { %1250 = vmatpush.msra.mxu2 %v1952_v42  ;;  %v1552_v42 = vld [vmem:[%s2644_s3 + $0x370] sm:$0xff] }
 0x929   :  { %1186 = vmatpush.msra.mxu1 %v1552_v42 }
 0x92a   :  { %1251 = vmatpush.msra.mxu2 %v1958_v39  ;;  %v1551_v39 = vld [vmem:[%s2644_s3 + $0x368] sm:$0xff] }
 0x92b   :  { %1187 = vmatpush.msra.mxu1 %v1551_v39  ;;  %v1555_v39 = vld [vmem:[%s2644_s3 + $0x388] sm:$0xff] }
 0x92c   :  { %1252 = vmatpush.msra.mxu2 %v1964_v51 }
 0x92d   :  { %1594 = vmatmul.msk.f32.vlgmr.msrb.gmra.mxu2 %vm104_vm0, %v1056_v11  ;;  %1188 = vmatpush.msra.mxu1 %v1550_v24  ;;  %v1556_v11 = vld [vmem:[%s2644_s3 + $0x390] sm:$0xff]  ;;  %v1554_v24 = vld [vmem:[%s2644_s3 + $0x380] sm:$0xff] }
 0x92e   :  { %1218 = vmatpush.msrb.mxu3 %v1556_v11 }
 0x92f   :  { %1189 = vmatpush.msra.mxu1 %v1549_v37 }
 0x930   :  { %1219 = vmatpush.msrb.mxu3 %v1555_v39 }
 0x931   :  { %1190 = vmatpush.msra.mxu1 %v1548_v18 }
 0x932   :  { %1220 = vmatpush.msrb.mxu3 %v1554_v24 }
 0x933   :  { %1191 = vmatpush.msra.mxu1 %v1547_v21 }
 0x935   :  { %1192 = vmatpush.msra.mxu1 %v1546_v27 }
 0x937   :  { %1193 = vmatpush.msra.mxu1 %v1545_v30 }
 0x939   :  { %1194 = vmatpush.msra.mxu1 %v1544_v34 }
 0x93b   :  { %1195 = vmatpush.msra.mxu1 %v1543_v40 }
 0x93d   :  { %1196 = vmatpush.msra.mxu1 %v1542_v47 }
 0x93f   :  { %1197 = vmatpush.msra.mxu1 %v1541_v16 }
 0x941   :  { %1198 = vmatpush.msra.mxu1 %v1540_v56 }
 0x943   :  { %1199 = vmatpush.msra.mxu1 %v1539_v3 }
 0x945   :  { %1200 = vmatpush.msra.mxu1 %v1538_v61 }
 0x9a8   :  { %v1082_v51 = vpop.f32.mrf.mxu2 }
 0x9a9   :  { %v2414_v14 = vadd.f32 %v1082_v51, %v1058_v13 }
 0x9ab   :  { %v2420_v15 = vmul.f32 0.70710677, %v2414_v14 }
 0x9ad   :  { %v2429_v38 = vand.u32 2147483647, %v2420_v15  ;;  %vm1173_vm9 = vcmp.ge.f32.partialorder %v2420_v15, 0.0 }
 0x9af   :  { %v1109_v20 = vmul.f32 0.3275911, %v2429_v38  ;;  %v1161_v6 = vsub.f32 0.0, %v2429_v38 }
 0x9b0   :  { %v1102_v22 = vpop.f32.mrf.mxu2 }
 0x9b1   :  { %v1111_v23 = vadd.f32 1.0, %v1109_v20  ;;  %v2444_v25 = vadd.f32 %v1102_v22, %v1059_v17  ;;  %v1163_v28 = vmul.f32 %v1161_v6, %v2429_v38  ;;  %v1532_v6 = vld [vmem:[%s2643_s2 + $0x150] sm:$0xff] }
 0x9b3   :  { %1648 = vrcp.f32 %v1111_v23  ;;  %v2459_v33 = vmul.f32 0.70710677, %v2444_v25  ;;  %v1124_v2 = vand.u32 2147483648, %v1111_v23  ;;  %v1122_v59 = vand.u32 2147483647, %v1111_v23 }
 0x9b4   :  { %vm1118_vm2 = vweird.f32 %v1111_v23  ;;  %v1165_v38 = vmul.f32 1.442695, %v1163_v28 }
 0x9b5   :  { %v2468_v36 = vand.u32 2147483647, %v2459_v33  ;;  %v1125_v4 = vor.u32 1.1754944e-38, %v1124_v2  ;;  %vm1123_vm4 = vcmp.eq.f32.partialorder %v1122_v59, 8.507059e+37  ;;  %vm1174_vm10 = vcmp.ge.f32.partialorder %v2459_v33, 0.0  ;;  %v1533_v33 = vld [vmem:[%s2643_s2 + $0x170] sm:$0xff] }
 0x9b6   :  { %1293 = vmatpush.msra.mxu0 %v1533_v33 }
 0x9b7   :  { %v1110_v43 = vmul.f32 0.3275911, %v2468_v36  ;;  %v1162_v21 = vsub.f32 0.0, %v2468_v36 }
 0x9b8   :  { %1294 = vmatpush.msra.mxu0 %v1532_v6 }
 0x9b9   :  { %v1649_v45 = vpop.eup %1648  ;;  %v1112_v49 = vadd.f32 1.0, %v1110_v43  ;;  %v1164_v29 = vmul.f32 %v1162_v21, %v2468_v36 }
 0x9ba   :  { %v1114_v32 = vmul.f32 %v1649_v45, %v1111_v23  ;;  %vm1119_vm1 = vweird.f32 %v1649_v45 }
 0x9bb   :  { %1650 = vrcp.f32 %v1112_v49  ;;  %vm1120_vm3 = vmor %vm1118_vm2, %vm1119_vm1  ;;  %v1139_v12 = vand.u32 2147483648, %v1112_v49  ;;  %v1137_v42 = vand.u32 2147483647, %v1112_v49  ;;  %vm1133_vm6 = vweird.f32 %v1112_v49 }
 0x9bc   :  { %v1115_v54 = vsub.f32 1.0, %v1114_v32  ;;  %1652 = vpow2.f32 %v1165_v38  ;;  %v1167_v40 = vmul.f32 1.442695, %v1164_v29  ;;  %v1585_v38 = vld [vmem:[%s2644_s3 + $0x478] sm:$0xff]  ;;  %v1580_v29 = vld [vmem:[%s2644_s3 + $0x450] sm:$0xff] }
 0x9bd   :  { %v1140_v17 = vor.u32 1.1754944e-38, %v1139_v12  ;;  %vm1138_vm8 = vcmp.eq.f32.partialorder %v1137_v42, 8.507059e+37  ;;  %1341 = vmatpush.msrb.mxu2 %v1585_v38 }
 0x9be   :  { %v1116_v0 = vmul.f32 %v1649_v45, %v1115_v54  ;;  %1654 = vpow2.f32 %v1167_v40  ;;  %v1179_v54 = vmul.f32 0.5, %v2414_v14  ;;  %v1610_v14 = vld [vmem:[%s2645_s4 + $0xf] ss:$0 sm:$0xff] }
 0x9c0   :  { %v1117_v60 = vadd.f32 %v1649_v45, %v1116_v0 }
 0x9c1   :  { %v1651_v62 = vpop.eup %1650 }
 0x9c2   :  { %v1121_v63 = vsel %vm1120_vm3, %v1649_v45, %v1117_v60  ;;  %v1129_v7 = vmul.f32 %v1651_v62, %v1112_v49  ;;  %vm1134_vm5 = vweird.f32 %v1651_v62  ;;  %v1653_v41 = vpop.eup %1652  ;;  %v1180_v60 = vmul.f32 0.5, %v2444_v25 }
 0x9c3   :  { %v1126_v5 = vsel %vm1123_vm4, %v1125_v4, %v1121_v63  ;;  %vm1135_vm7 = vmor %vm1133_vm6, %vm1134_vm5  ;;  %vm1399_vm4 = vcmask 64512  }
 0x9c4   :  { %v1143_v9 = vmul.f32 1.0614054, %v1126_v5  ;;  %v1130_v10 = vsub.f32 1.0, %v1129_v7  ;;  %v1655_v56 = vpop.eup %1654  ;;  %v1531_v7 = vld [vmem:[%s2643_s2 + $0x130] sm:$0xff] }
 0x9c5   :  { %1295 = vmatpush.msra.mxu0 %v1531_v7 }
 0x9c6   :  { %v1145_v58 = vadd.f32 -1.4531521, %v1143_v9  ;;  %v1131_v13 = vmul.f32 %v1651_v62, %v1130_v10 }
 0x9c7   :  { %1296 = vmatpush.msra.mxu0 %v1530_v8 }
 0x9c8   :  { %v1147_v51 = vmul.f32 %v1145_v58, %v1126_v5  ;;  %v1132_v37 = vadd.f32 %v1651_v62, %v1131_v13 }
 0x9ca   :  { %v1149_v44 = vadd.f32 1.4214138, %v1147_v51  ;;  %v1136_v18 = vsel %vm1135_vm7, %v1651_v62, %v1132_v37 }
 0x9cb   :  { %v1141_v20 = vsel %vm1138_vm8, %v1140_v17, %v1136_v18  ;;  %v1584_v18 = vld [vmem:[%s2644_s3 + $0x470] sm:$0xff] }
 0x9cc   :  { %v1151_v19 = vmul.f32 %v1149_v44, %v1126_v5  ;;  %v1144_v55 = vmul.f32 1.0614054, %v1141_v20  ;;  %1342 = vmatpush.msrb.mxu2 %v1584_v18  ;;  %v1613_v18 = vld [vmem:[%s2645_s4 + $0x11] ss:$0 sm:$0xff] }
 0x9ce   :  { %v1153_v22 = vadd.f32 -0.28449672, %v1151_v19  ;;  %v1146_v23 = vadd.f32 -1.4531521, %v1144_v55  ;;  %v1611_v19 = vld [vmem:[%s2645_s4 + $0xe] ss:$0 sm:$0xff] }
 0x9cf   :  { %v1582_v55 = vld [vmem:[%s2644_s3 + $0x460] sm:$0xff] }
 0x9d0   :  { %v1155_v27 = vmul.f32 %v1153_v22, %v1126_v5  ;;  %v1148_v30 = vmul.f32 %v1146_v23, %v1141_v20  ;;  %v1581_v23 = vld [vmem:[%s2644_s3 + $0x458] sm:$0xff] }
 0x9d2   :  { %v1157_v31 = vadd.f32 0.2548296, %v1155_v27  ;;  %v1150_v34 = vadd.f32 1.4214138, %v1148_v30 }
 0x9d4   :  { %v1159_v35 = vmul.f32 %v1157_v31, %v1126_v5  ;;  %v1152_v43 = vmul.f32 %v1150_v34, %v1141_v20  ;;  %v1579_v31 = vld [vmem:[%s2644_s3 + $0x448] sm:$0xff] }
 0x9d6   :  { %v1169_v45 = vmul.f32 %v1653_v41, %v1159_v35  ;;  %v1154_v47 = vadd.f32 -0.28449672, %v1152_v43  ;;  %v1578_v35 = vld [vmem:[%s2644_s3 + $0x440] sm:$0xff]  ;;  %v1577_v41 = vld [vmem:[%s2644_s3 + $0x438] sm:$0xff]  ;;  %v1576_v43 = vld [vmem:[%s2644_s3 + $0x430] sm:$0xff] }
 0x9d8   :  { %v1171_v48 = vsub.f32 1.0, %v1169_v45  ;;  %v1156_v32 = vmul.f32 %v1154_v47, %v1141_v20  ;;  %v1575_v45 = vld [vmem:[%s2644_s3 + $0x428] sm:$0xff]  ;;  %v1574_v47 = vld [vmem:[%s2644_s3 + $0x420] sm:$0xff] }
 0x9da   :  { %v1175_v49 = vsub.f32 0.0, %v1171_v48  ;;  %v1158_v16 = vadd.f32 0.2548296, %v1156_v32 }
 0x9dc   :  { %v1177_v53 = vsel %vm1173_vm9, %v1171_v48, %v1175_v49  ;;  %v1160_v2 = vmul.f32 %v1158_v16, %v1141_v20  ;;  %v1583_v20 = vld [vmem:[%s2644_s3 + $0x468] sm:$0xff]  ;;  %v1573_v49 = vld [vmem:[%s2644_s3 + $0x418] sm:$0xff] }
 0x9dd   :  { %v1181_v36 = vadd.f32 1.0, %v1177_v53  ;;  %1343 = vmatpush.msrb.mxu2 %v1583_v20  ;;  %v1572_v53 = vld [vmem:[%s2644_s3 + $0x410] sm:$0xff]  ;;  %v939_v20 = vadd.f32 %v2358_v50, %v2075_v1 }
 0x9de   :  { %v1170_v0 = vmul.f32 %v1655_v56, %v1160_v2  ;;  %v1571_v56 = vld [vmem:[%s2644_s3 + $0x408] sm:$0xff] }
 0x9df   :  { %v1183_v57 = vmul.f32 %v1181_v36, %v1179_v54  ;;  %1344 = vmatpush.msrb.mxu2 %v1582_v55 }
 0x9e0   :  { %v1172_v59 = vsub.f32 1.0, %v1170_v0 }
 0x9e1   :  { %1201 = vmatmul.f32.vlgmr.msra.gmra.mxu1 %v1183_v57  ;;  %1345 = vmatpush.msrb.mxu2 %v1581_v23  ;;  %v1570_v57 = vld [vmem:[%s2644_s3 + $0x400] sm:$0xff] }
 0x9e2   :  { %v1176_v3 = vsub.f32 0.0, %v1172_v59 }
 0x9e3   :  { %1346 = vmatpush.msrb.mxu2 %v1580_v29 }
 0x9e4   :  { %v1178_v26 = vsel %vm1174_vm10, %v1172_v59, %v1176_v3  ;;  %v1537_v3 = vld [vmem:[%s2643_s2 + $0x178] sm:$0xff] }
 0x9e5   :  { %v1182_v4 = vadd.f32 1.0, %v1178_v26  ;;  %1347 = vmatpush.msrb.mxu2 %v1579_v31  ;;  %v1536_v26 = vld [vmem:[%s2643_s2 + $0x158] sm:$0xff]  ;;  %1384 = vmatpush.msrb.mxu0 %v1537_v3 }
 0x9e7   :  { %v1184_v61 = vmul.f32 %v1182_v4, %v1180_v60  ;;  %1348 = vmatpush.msrb.mxu2 %v1578_v35  ;;  %1385 = vmatpush.msrb.mxu0 %v1536_v26 }
 0x9e9   :  { %1221 = vmatmul.f32.vlgmr.msrb.gmra.mxu3 %v1184_v61  ;;  %1349 = vmatpush.msrb.mxu2 %v1577_v41 }
 0x9eb   :  { %1350 = vmatpush.msrb.mxu2 %v1576_v43 }
 0x9ed   :  { %1351 = vmatpush.msrb.mxu2 %v1575_v45 }
 0x9ef   :  { %1352 = vmatpush.msrb.mxu2 %v1574_v47 }
 0x9f1   :  { %1353 = vmatpush.msrb.mxu2 %v1573_v49 }
 0x9f3   :  { %1354 = vmatpush.msrb.mxu2 %v1572_v53 }
 0x9f5   :  { %1355 = vmatpush.msrb.mxu2 %v1571_v56 }
 0x9f7   :  { %1356 = vmatpush.msrb.mxu2 %v1570_v57 }
 0xa5e   :  { %v1202_v15 = vpop.f32.mrf.mxu1 }
 0xa6c   :  { %v1222_v46 = vpop.f32.mrf.mxu3 }
 0xa6d   :  { %v1223_v62 = vadd.f32 %v1222_v46, %v1202_v15 }
 0xa6f   :  { %v1225_v63 = vadd.f32 %v1223_v62, %v2362_v52 }
 0xa71   :  { %v2531_v5 = vadd.f32 %v1610_v14, %v1225_v63 }
 0xa73   :  { %1595 = vmatmul.msk.f32.vlgmr.msra.gmra.mxu2 %vm104_vm0, %v2531_v5  ;;  %v1230_v25 = vmul.f32 %v2531_v5, %v2531_v5 }
 0xa7b   :  { %1596 = vmatmul.msk.f32.gmra.mxu2 %vm104_vm0, %v1230_v25 }
 0xaf6   :  { %v1254_v9 = vpop.f32.mrf.mxu2 }
 0xaf7   :  { %v1261_v10 = vmul.f32 %v1254_v9, %v1254_v9  ;;  %v1260_v37 = vsub.f32 %v2531_v5, %v1254_v9 }
 0xafe   :  { %v1257_v11 = vpop.f32.mrf.mxu2 }
 0xaff   :  { %v1262_v58 = vsub.f32 %v1257_v11, %v1261_v10 }
 0xb01   :  { %v1263_v12 = vadd.f32 1e-05, %v1262_v58 }
 0xb03   :  { %1656 = vrsqrt.f32 %v1263_v12  ;;  %vm1270_vm12 = vweird.f32 %v1263_v12 }
 0xb09   :  { %v1657_v28 = vpop.eup %1656 }
 0xb0a   :  { %v1265_v13 = vmul.f32 %v1657_v28, %v1263_v12  ;;  %vm1271_vm11 = vweird.f32 %v1657_v28 }
 0xb0b   :  { %vm1272_vm13 = vmor %vm1270_vm12, %vm1271_vm11 }
 0xb0c   :  { %v1266_v42 = vmul.f32 %v1657_v28, %v1265_v13 }
 0xb0e   :  { %v1267_v39 = vmul.f32 0.5, %v1266_v42 }
 0xb10   :  { %v1268_v51 = vsub.f32 1.5, %v1267_v39 }
 0xb12   :  { %v1269_v24 = vmul.f32 %v1657_v28, %v1268_v51  ;;  %v1535_v51 = vld [vmem:[%s2643_s2 + $0x138] sm:$0xff] }
 0xb13   :  { %1386 = vmatpush.msrb.mxu0 %v1535_v51 }
 0xb14   :  { %v1273_v44 = vsel %vm1272_vm13, %v1657_v28, %v1269_v24  ;;  %v1534_v24 = vld [vmem:[%s2643_s2 + $0x118] sm:$0xff] }
 0xb15   :  { %v1274_v17 = vmul.f32 %v1273_v44, %v1260_v37  ;;  %1387 = vmatpush.msrb.mxu0 %v1534_v24  ;;  %v1612_v37 = vld [vmem:[%s2645_s4 + $0x10] ss:$0 sm:$0xff]  ;;  %s1721_s4 = smov [#allocation4]  }
 0xb16   :  { %s1417_s12 = sshll.u32 %s1721_s4, 4  ;;  %s1418_s12 = int_to_ptr.vmem [resolvable:$true] %s1417_s12 }
 0xb17   :  { %1597 = vmatmul.msk.f32.vlgmr.msra.gmra.mxu0 %vm104_vm0, %v1274_v17 }
 0xb94   :  { %v1298_v21 = vpop.f32.mrf.mxu0 }
 0xb95   :  { %v2567_v22 = vadd.f32 %v1611_v19, %v1298_v21 }
 0xb97   :  { %v2573_v27 = vmul.f32 0.70710677, %v2567_v22  ;;  %v1338_v13 = vmul.f32 0.5, %v2567_v22 }
 0xb99   :  { %v1302_v30 = vand.u32 2147483647, %v2573_v27  ;;  %vm1335_vm3 = vcmp.ge.f32.partialorder %v2573_v27, 0.0 }
 0xb9b   :  { %v1303_v34 = vmul.f32 0.3275911, %v1302_v30  ;;  %v1329_v61 = vsub.f32 0.0, %v1302_v30 }
 0xb9d   :  { %v1304_v40 = vadd.f32 1.0, %v1303_v34  ;;  %v1330_v62 = vmul.f32 %v1329_v61, %v1302_v30 }
 0xb9f   :  { %1658 = vrcp.f32 %v1304_v40  ;;  %v1316_v54 = vand.u32 2147483648, %v1304_v40  ;;  %v1314_v2 = vand.u32 2147483647, %v1304_v40  ;;  %vm1310_vm15 = vweird.f32 %v1304_v40 }
 0xba0   :  { %v1331_v25 = vmul.f32 1.442695, %v1330_v62 }
 0xba1   :  { %v1317_v59 = vor.u32 1.1754944e-38, %v1316_v54  ;;  %vm1315_vm2 = vcmp.eq.f32.partialorder %v1314_v2, 8.507059e+37 }
 0xba2   :  { %1660 = vpow2.f32 %v1331_v25 }
 0xba5   :  { %v1659_v48 = vpop.eup %1658 }
 0xba6   :  { %v1306_v32 = vmul.f32 %v1659_v48, %v1304_v40  ;;  %vm1311_vm14 = vweird.f32 %v1659_v48 }
 0xba7   :  { %vm1312_vm1 = vmor %vm1310_vm15, %vm1311_vm14 }
 0xba8   :  { %v1307_v16 = vsub.f32 1.0, %v1306_v32  ;;  %v1661_v10 = vpop.eup %1660 }
 0xbaa   :  { %v1308_v36 = vmul.f32 %v1659_v48, %v1307_v16 }
 0xbac   :  { %v1309_v0 = vadd.f32 %v1659_v48, %v1308_v36 }
 0xbae   :  { %v1313_v60 = vsel %vm1312_vm1, %v1659_v48, %v1309_v0 }
 0xbaf   :  { %v1318_v4 = vsel %vm1315_vm2, %v1317_v59, %v1313_v60 }
 0xbb0   :  { %v1320_v15 = vmul.f32 1.0614054, %v1318_v4 }
 0xbb2   :  { %v1321_v46 = vadd.f32 -1.4531521, %v1320_v15 }
 0xbb4   :  { %v1322_v14 = vmul.f32 %v1321_v46, %v1318_v4 }
 0xbb6   :  { %v1323_v63 = vadd.f32 1.4214138, %v1322_v14 }
 0xbb8   :  { %v1324_v33 = vmul.f32 %v1323_v63, %v1318_v4 }
 0xbba   :  { %v1325_v6 = vadd.f32 -0.28449672, %v1324_v33 }
 0xbbc   :  { %v1326_v7 = vmul.f32 %v1325_v6, %v1318_v4 }
 0xbbe   :  { %v1327_v8 = vadd.f32 0.2548296, %v1326_v7 }
 0xbc0   :  { %v1328_v9 = vmul.f32 %v1327_v8, %v1318_v4 }
 0xbc2   :  { %v1333_v11 = vmul.f32 %v1661_v10, %v1328_v9 }
 0xbc4   :  { %v1334_v58 = vsub.f32 1.0, %v1333_v11 }
 0xbc6   :  { %v1336_v12 = vsub.f32 0.0, %v1334_v58 }
 0xbc8   :  { %v1337_v28 = vsel %vm1335_vm3, %v1334_v58, %v1336_v12 }
 0xbc9   :  { %v1339_v42 = vadd.f32 1.0, %v1337_v28 }
 0xbcb   :  { %v1340_v39 = vmul.f32 %v1339_v42, %v1338_v13 }
 0xbcd   :  { %1357 = vmatmul.f32.vlgmr.msrb.gmra.mxu2 %v1340_v39 }
 0xc50   :  { %v1358_v44 = vpop.f32.mrf.mxu2 }
 0xc51   :  { %v1361_v17 = vadd.f32 %v1358_v44, %v2531_v5 }
 0xc53   :  { %v1365_v38 = vadd.f32 %v1612_v37, %v1361_v17 }
 0xc55   :  { %1598 = vmatmul.msk.f32.vlgmr.msrb.gmra.mxu0 %vm104_vm0, %v1365_v38 }
 0xcd2   :  { %v1389_v19 = vpop.f32.mrf.mxu0 }
 0xcd3   :  { %v1390_v21 = vadd.f32 %v1613_v18, %v1389_v19 }
 0xcd5   :  { %v1392_v5 = vsub.f32 %v2362_v52, %v1390_v21  ;;  %v1393_v55 = vadd.f32 %v1390_v21, %v939_v20 }
 0xcd7   :  { %1394 = vst.msk [vmem:[#allocation2] sm:$0xff] %vm104_vm0, %v1392_v5  ;;  %1396 = vrot.lane.b32.xlu0 %v1393_v55, %s1720_s11 }
 0xcd8   :  { %1411 = dma.vmem_to_hbm [thread:$0]  %s1407_s9, 128, %s1409_s10, [#allocation3]  }
 0xd49   :  { %v1397_v1 = vpop.permute.xlu0 %1396 }
 0xd4a   :  { %1400 = vst.msk [vmem:[#allocation4] sm:$0xff] %vm1399_vm4, %v1397_v1 }
 0xd4b   :  { %1422 = dma.vmem_to_hbm [thread:$0]  %s1418_s12, 128, %s1420_s5, [#allocation5]  }
 0xd4c   :  { %1715 = dma.done.wait [#allocation3], 128  }
 0xd4d   :  { %1716 = vsyncadd [#allocation3], 4294967168 }
 0xd4e   :  { %1717 = dma.done.wait [#allocation5], 128  }
 0xd4f   :  { %1718 = vsyncadd [#allocation5], 4294967168 }
 0xd50   :  { %1431 = vsyncpa [#allocation3], 1 }
 0xd51   :  { %1432 = vsyncpa [#allocation5], 1 }

</bundles_post_ra>
